<compile_context>
chip_gen: v7x
topology: tpu7x:2x2x1
jax: 0.10.0
libtpu: 0.0.40
codegen_flags: <defaults>
</compile_context>

<pallas_src>
import jax
import jax.numpy as jnp
from jax import lax
from jax.experimental import pallas as pl
from jax.experimental.pallas import tpu as pltpu

LN_EPS = 1e-5


def _round_up(v, m):
    return ((v + m - 1) // m) * m


def _make_kernel(num_heads, seq_len, f_pad, d_pad, feat_true):
    H = num_heads
    N = seq_len
    Fp = f_pad
    dp = d_pad
    inv_f = 1.0 / float(feat_true)                       # LN divides by true F
    scale = 1.0 / float(feat_true // num_heads) ** 0.5   # 1/sqrt(true head_dim)

    # (H, N, K) x (H, K, M) -> (H, N, M)
    BMM = (((2,), (1,)), ((0,), (0,)))
    # (H, N, d) x (H, M, d) -> (H, N, M)   (QK^T without materializing .T)
    BQKT = (((2,), (2,)), ((0,), (0,)))

    def ln(x, g, b):
        # Padding-safe LayerNorm: padded lanes of x are 0 and gamma/beta are 0
        # there, so output padded lanes stay exactly 0.
        mean = jnp.sum(x, axis=-1, keepdims=True) * inv_f
        msq = jnp.sum(x * x, axis=-1, keepdims=True) * inv_f
        var = msq - mean * mean
        return (x - mean) * lax.rsqrt(var + LN_EPS) * g + b

    def kernel(x_ref, ln0g, ln0b,
               wqkv, bqkv, wo, bo, w1, b1, w2, b2,
               n1g, n1b, n2g, n2b,
               pw, pb, o_ref, x_carry):
        l = pl.program_id(1)

        @pl.when(l == 0)
        def _init():
            x_carry[...] = ln(x_ref[...], ln0g[...], ln0b[...])

        x = x_carry[...]                                   # (N, Fp) f32
        xb = x.astype(jnp.bfloat16)
        xh = jnp.broadcast_to(xb[None], (H, N, Fp))        # (H, N, Fp) bf16

        # ---- multi-head self-attention (fused QKV, batched over heads) ----
        qkv = lax.dot_general(xh, wqkv[...], BMM,
                              preferred_element_type=jnp.float32) + bqkv[...]
        q = qkv[:, :, :dp]                                  # (H, N, dp) f32
        k = qkv[:, :, dp:2 * dp]
        v = qkv[:, :, 2 * dp:]

        s = lax.dot_general(q.astype(jnp.bfloat16), k.astype(jnp.bfloat16),
                            BQKT, preferred_element_type=jnp.float32) * scale
        s = s - jnp.max(s, axis=-1, keepdims=True)
        p = jnp.exp(s)
        p = p * pl.reciprocal(jnp.sum(p, axis=-1, keepdims=True), approx=True)

        o = lax.dot_general(p.astype(jnp.bfloat16), v.astype(jnp.bfloat16),
                            BMM, preferred_element_type=jnp.float32)   # (H,N,dp)
        a_parts = lax.dot_general(o.astype(jnp.bfloat16), wo[...],
                                  BMM, preferred_element_type=jnp.float32)
        attn = jnp.sum(a_parts, axis=0) + bo[...]                       # (N, Fp)

        x = ln(x + attn, n1g[...], n1b[...])

        # ---- feed-forward ----
        h = jnp.dot(x.astype(jnp.bfloat16), w1[...],
                    preferred_element_type=jnp.float32) + b1[...]
        h = jnp.maximum(h, 0.0)
        ff = jnp.dot(h.astype(jnp.bfloat16), w2[...],
                     preferred_element_type=jnp.float32) + b2[...]

        x = ln(x + ff, n2g[...], n2b[...])
        x_carry[...] = x

        # ---- final projection, only after the last layer (lane-dense store) ----
        @pl.when(l == pl.num_programs(1) - 1)
        def _final():
            out = jnp.dot(x.astype(jnp.bfloat16), pw[...],
                          preferred_element_type=jnp.float32) + pb[...]
            o_ref[...] = out

    return kernel


def init_params(key, input_dim, hidden_dim, output_dim, num_layers):
    """Deterministic synthetic parameters; PyTorch (out_features, in_features) layout."""
    keys = iter(jax.random.split(key, 32))

    def nrm(shape, scale=0.05):
        return (scale * jax.random.normal(next(keys), shape)).astype(jnp.float32)

    L, F, H, O = num_layers, input_dim, hidden_dim, output_dim
    return {
        "ln0_g": (1.0 + nrm((1, F))), "ln0_b": nrm((1, F)),
        "in_w":  nrm((L, 3 * F, F)),  "in_b":  nrm((L, 1, 3 * F)),
        "out_w": nrm((L, F, F)),      "out_b": nrm((L, 1, F)),
        "w1":    nrm((L, H, F)),      "b1":    nrm((L, 1, H)),
        "w2":    nrm((L, F, H)),      "b2":    nrm((L, 1, F)),
        "n1_g":  (1.0 + nrm((L, 1, F))), "n1_b": nrm((L, 1, F)),
        "n2_g":  (1.0 + nrm((L, 1, F))), "n2_b": nrm((L, 1, F)),
        "p_w":   nrm((O, F)),         "p_b":   nrm((1, O)),
    }


def qformer_pallas(x, p, *, num_heads, num_layers):
    B, N, F = x.shape
    L = num_layers
    Hh = num_heads
    d = F // Hh
    Hff = p["w1"].shape[1]
    OUT = p["p_w"].shape[0]

    assert F % Hh == 0
    assert N % 8 == 0, "sequence length must be a multiple of 8 (sublane tile)"

    # Lane padding (everything to multiples of 128 lanes).
    Fp = _round_up(F, 128)
    dp = _round_up(d, 128)
    Hp = _round_up(Hff, 128)
    Op = _round_up(OUT, 128)

    f32, bf16 = jnp.float32, jnp.bfloat16

    def pad(a, shape):
        return jnp.pad(a, [(0, t - s) for s, t in zip(a.shape, shape)])

    # ---- attention projections, head-split & zero-padded, (in, out) layout ----
    Wqkv_t = p["in_w"].transpose(0, 2, 1)                     # (L, in=F, out=3F)

    def head_w(sel):
        w = Wqkv_t[:, :, sel]                                 # (L, F, F) [in, out]
        w = w.reshape(L, F, Hh, d).transpose(0, 2, 1, 3)      # (L, H, F, d)
        return pad(w, (L, Hh, Fp, dp))

    def head_b(sel):
        b = p["in_b"][:, 0, sel].reshape(L, Hh, 1, d)         # (L, H, 1, d)
        return pad(b, (L, Hh, 1, dp))

    # Fused QKV operands: (L, H, Fp, 3*dp) / (L, H, 1, 3*dp).
    wqkv = jnp.concatenate(
        [head_w(slice(0, F)), head_w(slice(F, 2 * F)), head_w(slice(2 * F, 3 * F))],
        axis=-1).astype(bf16)
    bqkv = jnp.concatenate(
        [head_b(slice(0, F)), head_b(slice(F, 2 * F)), head_b(slice(2 * F, 3 * F))],
        axis=-1).astype(f32)

    wo3 = p["out_w"].transpose(0, 2, 1).reshape(L, Hh, d, F)  # (L, H, d, out=F)
    wo3 = pad(wo3, (L, Hh, dp, Fp)).astype(bf16)
    bo = pad(p["out_b"], (L, 1, Fp)).astype(f32)

    w1 = pad(p["w1"].transpose(0, 2, 1), (L, Fp, Hp)).astype(bf16)
    b1 = pad(p["b1"], (L, 1, Hp)).astype(f32)
    w2 = pad(p["w2"].transpose(0, 2, 1), (L, Hp, Fp)).astype(bf16)
    b2 = pad(p["b2"], (L, 1, Fp)).astype(f32)

    # LayerNorm params: gamma/beta zero-padded so padded lanes stay zero.
    ln0g = pad(p["ln0_g"], (1, Fp)).astype(f32)
    ln0b = pad(p["ln0_b"], (1, Fp)).astype(f32)
    n1g = pad(p["n1_g"], (L, 1, Fp)).astype(f32)
    n1b = pad(p["n1_b"], (L, 1, Fp)).astype(f32)
    n2g = pad(p["n2_g"], (L, 1, Fp)).astype(f32)
    n2b = pad(p["n2_b"], (L, 1, Fp)).astype(f32)

    pw = pad(p["p_w"].T, (Fp, Op)).astype(bf16)
    pb = pad(p["p_b"], (1, Op)).astype(f32)

    xp = pad(x, (B, N, Fp)).astype(f32)

    per_layer_args = [wqkv, bqkv, wo3, bo, w1, b1, w2, b2,
                      n1g, n1b, n2g, n2b]
    global_args = [ln0g, ln0b]
    tail_args = [pw, pb]

    def rep_spec(a):
        zero_idx = (0,) * a.ndim
        return pl.BlockSpec(a.shape, lambda b, l: zero_idx)

    def layer_spec(a):
        trail = (0,) * (a.ndim - 1)
        return pl.BlockSpec((None,) + tuple(a.shape[1:]),
                            lambda b, l: (l,) + trail)

    in_specs = ([pl.BlockSpec((None, N, Fp), lambda b, l: (b, 0, 0))]
                + [rep_spec(a) for a in global_args]
                + [layer_spec(a) for a in per_layer_args]
                + [rep_spec(a) for a in tail_args])

    kernel = _make_kernel(Hh, N, Fp, dp, F)

    # Advisory cost estimate for the XLA scheduler.
    flops_layer = (2 * N * Hh * Fp * (3 * dp)           # fused QKV
                   + 2 * Hh * N * N * dp * 2            # QK^T + PV
                   + 2 * N * Hh * dp * Fp               # out_proj
                   + 2 * N * Fp * Hp + 2 * N * Hp * Fp)  # FFN
    flops = B * (L * flops_layer + 2 * N * Fp * Op)
    transc = B * L * Hh * N * N
    bytes_accessed = (sum(int(a.size) * a.dtype.itemsize
                          for a in [xp] + global_args + per_layer_args + tail_args)
                      + B * N * Op * 4)
    cost = pl.CostEstimate(flops=flops, transcendentals=transc,
                           bytes_accessed=bytes_accessed)

    out_p = pl.pallas_call(
        kernel,
        out_shape=jax.ShapeDtypeStruct((B, N, Op), jnp.float32),
        grid_spec=pltpu.PrefetchScalarGridSpec(
            num_scalar_prefetch=0,
            grid=(B, L),                       # B parallel (2 TCs on v7x), L streamed
            in_specs=in_specs,
            out_specs=pl.BlockSpec((None, N, Op), lambda b, l: (b, 0, 0)),
            scratch_shapes=[pltpu.VMEM((N, Fp), jnp.float32)],   # x carried across layers
        ),
        compiler_params=pltpu.CompilerParams(
            dimension_semantics=("parallel", "arbitrary"),
            vmem_limit_bytes=32 * 1024 * 1024),
        cost_estimate=cost,
    )(xp, *global_args, *per_layer_args, *tail_args)

    return out_p[:, :, :OUT]


def qformer_ref(x, p, *, num_heads):
    """Pure-JAX reference mirroring torch.nn.TransformerEncoder (post-LN, dropout=0)."""
    B, N, F = x.shape
    hd = F // num_heads

    def ln(y, g, b):
        m = jnp.mean(y, -1, keepdims=True)
        v = jnp.mean((y - m) ** 2, -1, keepdims=True)
        return (y - m) / jnp.sqrt(v + LN_EPS) * g + b

    x = ln(x, p["ln0_g"][0], p["ln0_b"][0])
    L = p["in_w"].shape[0]
    for l in range(L):
        Wqkv, bqkv = p["in_w"][l], p["in_b"][l, 0]
        q = x @ Wqkv[:F].T + bqkv[:F]
        k = x @ Wqkv[F:2 * F].T + bqkv[F:2 * F]
        v = x @ Wqkv[2 * F:].T + bqkv[2 * F:]
        qh = q.reshape(B, N, num_heads, hd).transpose(0, 2, 1, 3)
        kh = k.reshape(B, N, num_heads, hd).transpose(0, 2, 1, 3)
        vh = v.reshape(B, N, num_heads, hd).transpose(0, 2, 1, 3)
        s = jnp.einsum("bhnd,bhmd->bhnm", qh, kh) / jnp.sqrt(hd).astype(jnp.float32)
        a = jax.nn.softmax(s, axis=-1)
        o = jnp.einsum("bhnm,bhmd->bhnd", a, vh).transpose(0, 2, 1, 3).reshape(B, N, F)
        attn = o @ p["out_w"][l].T + p["out_b"][l, 0]
        x = ln(x + attn, p["n1_g"][l, 0], p["n1_b"][l, 0])
        h = jax.nn.relu(x @ p["w1"][l].T + p["b1"][l, 0])
        ff = h @ p["w2"][l].T + p["b2"][l, 0]
        x = ln(x + ff, p["n2_g"][l, 0], p["n2_b"][l, 0])
    return x @ p["p_w"].T + p["p_b"][0]


if __name__ == "__main__":
    # Small, module-consistent shapes.
    B, N = 2, 8                  # batch, sequence length
    input_dim, hidden_dim, output_dim = 32, 64, 16
    num_heads, num_layers = 4, 2

    key = jax.random.PRNGKey(0)
    kx, kp = jax.random.split(key)
    x = jax.random.normal(kx, (B, N, input_dim), dtype=jnp.float32)
    params = init_params(kp, input_dim, hidden_dim, output_dim, num_layers)

    out = qformer_pallas(x, params, num_heads=num_heads, num_layers=num_layers)
    out = jax.block_until_ready(out)

    ref = jax.block_until_ready(qformer_ref(x, params, num_heads=num_heads))
    assert out.shape == (B, N, output_dim)
    assert bool(jnp.all(jnp.isfinite(out)))
    max_err = float(jnp.max(jnp.abs(out - ref)))
    assert max_err < 2e-2, f"mismatch vs reference: {max_err}"

    print("KERNEL_OK")
</pallas_src>

<mosaic_0001>
module attributes {stable_mosaic.version = 11 : i64} {
  func.func @kernel(%arg0: i32, %arg1: i32, %arg2: memref<1x8x128xf32, #tpu.memory_space<vmem>>, %arg3: memref<1x128xf32, #tpu.memory_space<vmem>>, %arg4: memref<1x128xf32, #tpu.memory_space<vmem>>, %arg5: memref<1x4x128x384xbf16, #tpu.memory_space<vmem>>, %arg6: memref<1x4x1x384xf32, #tpu.memory_space<vmem>>, %arg7: memref<1x4x128x128xbf16, #tpu.memory_space<vmem>>, %arg8: memref<1x1x128xf32, #tpu.memory_space<vmem>>, %arg9: memref<1x128x128xbf16, #tpu.memory_space<vmem>>, %arg10: memref<1x1x128xf32, #tpu.memory_space<vmem>>, %arg11: memref<1x128x128xbf16, #tpu.memory_space<vmem>>, %arg12: memref<1x1x128xf32, #tpu.memory_space<vmem>>, %arg13: memref<1x1x128xf32, #tpu.memory_space<vmem>>, %arg14: memref<1x1x128xf32, #tpu.memory_space<vmem>>, %arg15: memref<1x1x128xf32, #tpu.memory_space<vmem>>, %arg16: memref<1x1x128xf32, #tpu.memory_space<vmem>>, %arg17: memref<128x128xbf16, #tpu.memory_space<vmem>>, %arg18: memref<1x128xf32, #tpu.memory_space<vmem>>, %arg19: memref<1x8x128xf32, #tpu.memory_space<vmem>>, %arg20: memref<8x128xf32, #tpu.memory_space<vmem>>) attributes {dimension_semantics = [#tpu.dimension_semantics<parallel>, #tpu.dimension_semantics<arbitrary>], iteration_bounds = array<i64: 2, 2>, scalar_prefetch = 0 : i64, scratch_operands = 1 : i64, tpu.core_type = #tpu.core_type<tc>, window_params = [{transform_indices = @transform_0, window_bounds = array<i64: 1, 8, 128>}, {pipeline_mode = #tpu.pipeline_mode<synchronous>, transform_indices = @transform_1, window_bounds = array<i64: 1, 128>}, {pipeline_mode = #tpu.pipeline_mode<synchronous>, transform_indices = @transform_2, window_bounds = array<i64: 1, 128>}, {transform_indices = @transform_3, window_bounds = array<i64: 1, 4, 128, 384>}, {transform_indices = @transform_4, window_bounds = array<i64: 1, 4, 1, 384>}, {transform_indices = @transform_5, window_bounds = array<i64: 1, 4, 128, 128>}, {transform_indices = @transform_6, window_bounds = array<i64: 1, 1, 128>}, {transform_indices = @transform_7, window_bounds = array<i64: 1, 128, 128>}, {transform_indices = @transform_8, window_bounds = array<i64: 1, 1, 128>}, {transform_indices = @transform_9, window_bounds = array<i64: 1, 128, 128>}, {transform_indices = @transform_10, window_bounds = array<i64: 1, 1, 128>}, {transform_indices = @transform_11, window_bounds = array<i64: 1, 1, 128>}, {transform_indices = @transform_12, window_bounds = array<i64: 1, 1, 128>}, {transform_indices = @transform_13, window_bounds = array<i64: 1, 1, 128>}, {transform_indices = @transform_14, window_bounds = array<i64: 1, 1, 128>}, {pipeline_mode = #tpu.pipeline_mode<synchronous>, transform_indices = @transform_15, window_bounds = array<i64: 128, 128>}, {pipeline_mode = #tpu.pipeline_mode<synchronous>, transform_indices = @transform_16, window_bounds = array<i64: 1, 128>}, {transform_indices = @transform_17, window_bounds = array<i64: 1, 8, 128>}]} {
    %c0_i32 = arith.constant 0 : i32
    %0 = arith.cmpi eq, %arg1, %c0_i32 : i32
    %1 = arith.extui %0 : i1 to i32
    %c0_i32_0 = arith.constant 0 : i32
    %2 = arith.cmpi ne, %1, %c0_i32_0 : i32
    scf.if %2 {
      %c0_64 = arith.constant 0 : index
      %c0_65 = arith.constant 0 : index
      %c0_66 = arith.constant 0 : index
      %121 = vector.load %arg2[%c0_64, %c0_65, %c0_66] : memref<1x8x128xf32, #tpu.memory_space<vmem>>, vector<1x8x128xf32>
      %122 = vector.shape_cast %121 : vector<1x8x128xf32> to vector<8x128xf32>
      %c0_67 = arith.constant 0 : index
      %c0_68 = arith.constant 0 : index
      %123 = vector.load %arg3[%c0_67, %c0_68] : memref<1x128xf32, #tpu.memory_space<vmem>>, vector<1x128xf32>
      %c0_69 = arith.constant 0 : index
      %c0_70 = arith.constant 0 : index
      %124 = vector.load %arg4[%c0_69, %c0_70] : memref<1x128xf32, #tpu.memory_space<vmem>>, vector<1x128xf32>
      %cst_71 = arith.constant dense<0.000000e+00> : vector<8xf32>
      %125 = vector.multi_reduction <add>, %122, %cst_71 [1] : vector<8x128xf32> to vector<8xf32>
      %126 = vector.shape_cast %125 : vector<8xf32> to vector<8x1xf32>
      %cst_72 = arith.constant 3.125000e-02 : f32
      %127 = vector.broadcast %cst_72 : f32 to vector<8x1xf32>
      %128 = arith.mulf %126, %127 : vector<8x1xf32>
      %129 = arith.mulf %122, %122 : vector<8x128xf32>
      %cst_73 = arith.constant dense<0.000000e+00> : vector<8xf32>
      %130 = vector.multi_reduction <add>, %129, %cst_73 [1] : vector<8x128xf32> to vector<8xf32>
      %131 = vector.shape_cast %130 : vector<8xf32> to vector<8x1xf32>
      %cst_74 = arith.constant 3.125000e-02 : f32
      %132 = vector.broadcast %cst_74 : f32 to vector<8x1xf32>
      %133 = arith.mulf %131, %132 : vector<8x1xf32>
      %134 = arith.mulf %128, %128 : vector<8x1xf32>
      %135 = arith.subf %133, %134 : vector<8x1xf32>
      %136 = vector.broadcast %128 : vector<8x1xf32> to vector<8x128xf32>
      %137 = arith.subf %122, %136 : vector<8x128xf32>
      %cst_75 = arith.constant 9.99999974E-6 : f32
      %138 = vector.broadcast %cst_75 : f32 to vector<8x1xf32>
      %139 = arith.addf %135, %138 : vector<8x1xf32>
      %140 = math.rsqrt %139 : vector<8x1xf32>
      %141 = vector.broadcast %140 : vector<8x1xf32> to vector<8x128xf32>
      %142 = arith.mulf %137, %141 : vector<8x128xf32>
      %143 = vector.broadcast %123 : vector<1x128xf32> to vector<8x128xf32>
      %144 = arith.mulf %142, %143 : vector<8x128xf32>
      %145 = vector.broadcast %124 : vector<1x128xf32> to vector<8x128xf32>
      %146 = arith.addf %144, %145 : vector<8x128xf32>
      %c0_76 = arith.constant 0 : index
      %c0_77 = arith.constant 0 : index
      %147 = vector.load %arg20[%c0_76, %c0_77] : memref<8x128xf32, #tpu.memory_space<vmem>>, vector<8x128xf32>
      tpu.vector_store %arg20[%c0_76, %c0_77], %146 {strides = array<i32>} : memref<8x128xf32, #tpu.memory_space<vmem>>, vector<8x128xf32>,
    } else {
    }
    %c0 = arith.constant 0 : index
    %c0_1 = arith.constant 0 : index
    %3 = vector.load %arg20[%c0, %c0_1] : memref<8x128xf32, #tpu.memory_space<vmem>>, vector<8x128xf32>
    %4 = arith.truncf %3 : vector<8x128xf32> to vector<8x128xbf16>
    %5 = vector.shape_cast %4 : vector<8x128xbf16> to vector<1x8x128xbf16>
    %6 = vector.shape_cast %5 : vector<1x8x128xbf16> to vector<1x8x128xbf16>
    %7 = vector.broadcast %6 : vector<1x8x128xbf16> to vector<4x8x128xbf16>
    %c0_2 = arith.constant 0 : index
    %c0_3 = arith.constant 0 : index
    %c0_4 = arith.constant 0 : index
    %c0_5 = arith.constant 0 : index
    %8 = vector.load %arg5[%c0_2, %c0_3, %c0_4, %c0_5] : memref<1x4x128x384xbf16, #tpu.memory_space<vmem>>, vector<1x4x128x384xbf16>
    %9 = vector.shape_cast %8 : vector<1x4x128x384xbf16> to vector<4x128x384xbf16>
    %cst = arith.constant dense<0.000000e+00> : vector<4x8x384xf32>
    %10 = tpu.matmul %7, %9, %cst {dimension_numbers = #tpu.dot_dimension_numbers<[2], [1], [1], [2], [0, 0, 0, 1, 1, 2], [0], [0]>} : vector<4x8x128xbf16>, vector<4x128x384xbf16>, vector<4x8x384xf32> -> vector<4x8x384xf32>
    %c0_6 = arith.constant 0 : index
    %c0_7 = arith.constant 0 : index
    %c0_8 = arith.constant 0 : index
    %c0_9 = arith.constant 0 : index
    %11 = vector.load %arg6[%c0_6, %c0_7, %c0_8, %c0_9] : memref<1x4x1x384xf32, #tpu.memory_space<vmem>>, vector<1x4x1x384xf32>
    %12 = vector.shape_cast %11 : vector<1x4x1x384xf32> to vector<4x1x384xf32>
    %13 = vector.broadcast %12 : vector<4x1x384xf32> to vector<4x8x384xf32>
    %14 = arith.addf %10, %13 : vector<4x8x384xf32>
    %15 = vector.extract_strided_slice %14 {offsets = [0, 0, 0], sizes = [4, 8, 128], strides = [1, 1, 1]} : vector<4x8x384xf32> to vector<4x8x128xf32>
    %16 = vector.extract_strided_slice %14 {offsets = [0, 0, 128], sizes = [4, 8, 128], strides = [1, 1, 1]} : vector<4x8x384xf32> to vector<4x8x128xf32>
    %17 = vector.extract_strided_slice %14 {offsets = [0, 0, 256], sizes = [4, 8, 128], strides = [1, 1, 1]} : vector<4x8x384xf32> to vector<4x8x128xf32>
    %18 = arith.truncf %15 : vector<4x8x128xf32> to vector<4x8x128xbf16>
    %19 = arith.truncf %16 : vector<4x8x128xf32> to vector<4x8x128xbf16>
    %cst_10 = arith.constant dense<0.000000e+00> : vector<4x8x8xf32>
    %20 = tpu.matmul %18, %19, %cst_10 {dimension_numbers = #tpu.dot_dimension_numbers<[2], [2], [1], [1], [0, 0, 0, 1, 1, 1], [0], [0]>} : vector<4x8x128xbf16>, vector<4x8x128xbf16>, vector<4x8x8xf32> -> vector<4x8x8xf32>
    %cst_11 = arith.constant 0.353553385 : f32
    %21 = vector.broadcast %cst_11 : f32 to vector<4x8x8xf32>
    %22 = arith.mulf %20, %21 : vector<4x8x8xf32>
    %cst_12 = arith.constant dense<0xFF800000> : vector<4x8xf32>
    %23 = vector.multi_reduction <maximumf>, %22, %cst_12 [2] : vector<4x8x8xf32> to vector<4x8xf32>
    %24 = vector.shape_cast %23 : vector<4x8xf32> to vector<4x8x1xf32>
    %25 = vector.broadcast %24 : vector<4x8x1xf32> to vector<4x8x8xf32>
    %26 = arith.subf %22, %25 : vector<4x8x8xf32>
    %27 = math.exp %26 : vector<4x8x8xf32>
    %cst_13 = arith.constant dense<0.000000e+00> : vector<4x8xf32>
    %28 = vector.multi_reduction <add>, %27, %cst_13 [2] : vector<4x8x8xf32> to vector<4x8xf32>
    %29 = vector.shape_cast %28 : vector<4x8xf32> to vector<4x8x1xf32>
    %30 = tpu.reciprocal %29 {approx = true} : vector<4x8x1xf32> -> vector<4x8x1xf32>
    %31 = vector.broadcast %30 : vector<4x8x1xf32> to vector<4x8x8xf32>
    %32 = arith.mulf %27, %31 : vector<4x8x8xf32>
    %33 = arith.truncf %32 : vector<4x8x8xf32> to vector<4x8x8xbf16>
    %34 = arith.truncf %17 : vector<4x8x128xf32> to vector<4x8x128xbf16>
    %cst_14 = arith.constant dense<0.000000e+00> : vector<4x8x128xf32>
    %35 = tpu.matmul %33, %34, %cst_14 {dimension_numbers = #tpu.dot_dimension_numbers<[2], [1], [1], [2], [0, 0, 0, 1, 1, 2], [0], [0]>} : vector<4x8x8xbf16>, vector<4x8x128xbf16>, vector<4x8x128xf32> -> vector<4x8x128xf32>
    %36 = arith.truncf %35 : vector<4x8x128xf32> to vector<4x8x128xbf16>
    %c0_15 = arith.constant 0 : index
    %c0_16 = arith.constant 0 : index
    %c0_17 = arith.constant 0 : index
    %c0_18 = arith.constant 0 : index
    %37 = vector.load %arg7[%c0_15, %c0_16, %c0_17, %c0_18] : memref<1x4x128x128xbf16, #tpu.memory_space<vmem>>, vector<1x4x128x128xbf16>
    %38 = vector.shape_cast %37 : vector<1x4x128x128xbf16> to vector<4x128x128xbf16>
    %cst_19 = arith.constant dense<0.000000e+00> : vector<4x8x128xf32>
    %39 = tpu.matmul %36, %38, %cst_19 {dimension_numbers = #tpu.dot_dimension_numbers<[2], [1], [1], [2], [0, 0, 0, 1, 1, 2], [0], [0]>} : vector<4x8x128xbf16>, vector<4x128x128xbf16>, vector<4x8x128xf32> -> vector<4x8x128xf32>
    %cst_20 = arith.constant dense<0.000000e+00> : vector<8x128xf32>
    %40 = vector.multi_reduction <add>, %39, %cst_20 [0] : vector<4x8x128xf32> to vector<8x128xf32>
    %c0_21 = arith.constant 0 : index
    %c0_22 = arith.constant 0 : index
    %c0_23 = arith.constant 0 : index
    %41 = vector.load %arg8[%c0_21, %c0_22, %c0_23] : memref<1x1x128xf32, #tpu.memory_space<vmem>>, vector<1x1x128xf32>
    %42 = vector.shape_cast %41 : vector<1x1x128xf32> to vector<1x128xf32>
    %43 = vector.broadcast %42 : vector<1x128xf32> to vector<8x128xf32>
    %44 = arith.addf %40, %43 : vector<8x128xf32>
    %45 = arith.addf %3, %44 : vector<8x128xf32>
    %c0_24 = arith.constant 0 : index
    %c0_25 = arith.constant 0 : index
    %c0_26 = arith.constant 0 : index
    %46 = vector.load %arg13[%c0_24, %c0_25, %c0_26] : memref<1x1x128xf32, #tpu.memory_space<vmem>>, vector<1x1x128xf32>
    %47 = vector.shape_cast %46 : vector<1x1x128xf32> to vector<1x128xf32>
    %c0_27 = arith.constant 0 : index
    %c0_28 = arith.constant 0 : index
    %c0_29 = arith.constant 0 : index
    %48 = vector.load %arg14[%c0_27, %c0_28, %c0_29] : memref<1x1x128xf32, #tpu.memory_space<vmem>>, vector<1x1x128xf32>
    %49 = vector.shape_cast %48 : vector<1x1x128xf32> to vector<1x128xf32>
    %cst_30 = arith.constant dense<0.000000e+00> : vector<8xf32>
    %50 = vector.multi_reduction <add>, %45, %cst_30 [1] : vector<8x128xf32> to vector<8xf32>
    %51 = vector.shape_cast %50 : vector<8xf32> to vector<8x1xf32>
    %cst_31 = arith.constant 3.125000e-02 : f32
    %52 = vector.broadcast %cst_31 : f32 to vector<8x1xf32>
    %53 = arith.mulf %51, %52 : vector<8x1xf32>
    %54 = arith.mulf %45, %45 : vector<8x128xf32>
    %cst_32 = arith.constant dense<0.000000e+00> : vector<8xf32>
    %55 = vector.multi_reduction <add>, %54, %cst_32 [1] : vector<8x128xf32> to vector<8xf32>
    %56 = vector.shape_cast %55 : vector<8xf32> to vector<8x1xf32>
    %cst_33 = arith.constant 3.125000e-02 : f32
    %57 = vector.broadcast %cst_33 : f32 to vector<8x1xf32>
    %58 = arith.mulf %56, %57 : vector<8x1xf32>
    %59 = arith.mulf %53, %53 : vector<8x1xf32>
    %60 = arith.subf %58, %59 : vector<8x1xf32>
    %61 = vector.broadcast %53 : vector<8x1xf32> to vector<8x128xf32>
    %62 = arith.subf %45, %61 : vector<8x128xf32>
    %cst_34 = arith.constant 9.99999974E-6 : f32
    %63 = vector.broadcast %cst_34 : f32 to vector<8x1xf32>
    %64 = arith.addf %60, %63 : vector<8x1xf32>
    %65 = math.rsqrt %64 : vector<8x1xf32>
    %66 = vector.broadcast %65 : vector<8x1xf32> to vector<8x128xf32>
    %67 = arith.mulf %62, %66 : vector<8x128xf32>
    %68 = vector.broadcast %47 : vector<1x128xf32> to vector<8x128xf32>
    %69 = arith.mulf %67, %68 : vector<8x128xf32>
    %70 = vector.broadcast %49 : vector<1x128xf32> to vector<8x128xf32>
    %71 = arith.addf %69, %70 : vector<8x128xf32>
    %72 = arith.truncf %71 : vector<8x128xf32> to vector<8x128xbf16>
    %c0_35 = arith.constant 0 : index
    %c0_36 = arith.constant 0 : index
    %c0_37 = arith.constant 0 : index
    %73 = vector.load %arg9[%c0_35, %c0_36, %c0_37] : memref<1x128x128xbf16, #tpu.memory_space<vmem>>, vector<1x128x128xbf16>
    %74 = vector.shape_cast %73 : vector<1x128x128xbf16> to vector<128x128xbf16>
    %cst_38 = arith.constant dense<0.000000e+00> : vector<8x128xf32>
    %75 = tpu.matmul %72, %74, %cst_38 {dimension_numbers = #tpu.dot_dimension_numbers<[1], [0], [0], [1], [0, 0, 1, 1], [], []>} : vector<8x128xbf16>, vector<128x128xbf16>, vector<8x128xf32> -> vector<8x128xf32>
    %c0_39 = arith.constant 0 : index
    %c0_40 = arith.constant 0 : index
    %c0_41 = arith.constant 0 : index
    %76 = vector.load %arg10[%c0_39, %c0_40, %c0_41] : memref<1x1x128xf32, #tpu.memory_space<vmem>>, vector<1x1x128xf32>
    %77 = vector.shape_cast %76 : vector<1x1x128xf32> to vector<1x128xf32>
    %78 = vector.broadcast %77 : vector<1x128xf32> to vector<8x128xf32>
    %79 = arith.addf %75, %78 : vector<8x128xf32>
    %cst_42 = arith.constant 0.000000e+00 : f32
    %80 = vector.broadcast %cst_42 : f32 to vector<8x128xf32>
    %81 = arith.maximumf %79, %80 : vector<8x128xf32>
    %82 = arith.truncf %81 : vector<8x128xf32> to vector<8x128xbf16>
    %c0_43 = arith.constant 0 : index
    %c0_44 = arith.constant 0 : index
    %c0_45 = arith.constant 0 : index
    %83 = vector.load %arg11[%c0_43, %c0_44, %c0_45] : memref<1x128x128xbf16, #tpu.memory_space<vmem>>, vector<1x128x128xbf16>
    %84 = vector.shape_cast %83 : vector<1x128x128xbf16> to vector<128x128xbf16>
    %cst_46 = arith.constant dense<0.000000e+00> : vector<8x128xf32>
    %85 = tpu.matmul %82, %84, %cst_46 {dimension_numbers = #tpu.dot_dimension_numbers<[1], [0], [0], [1], [0, 0, 1, 1], [], []>} : vector<8x128xbf16>, vector<128x128xbf16>, vector<8x128xf32> -> vector<8x128xf32>
    %c0_47 = arith.constant 0 : index
    %c0_48 = arith.constant 0 : index
    %c0_49 = arith.constant 0 : index
    %86 = vector.load %arg12[%c0_47, %c0_48, %c0_49] : memref<1x1x128xf32, #tpu.memory_space<vmem>>, vector<1x1x128xf32>
    %87 = vector.shape_cast %86 : vector<1x1x128xf32> to vector<1x128xf32>
    %88 = vector.broadcast %87 : vector<1x128xf32> to vector<8x128xf32>
    %89 = arith.addf %85, %88 : vector<8x128xf32>
    %90 = arith.addf %71, %89 : vector<8x128xf32>
    %c0_50 = arith.constant 0 : index
    %c0_51 = arith.constant 0 : index
    %c0_52 = arith.constant 0 : index
    %91 = vector.load %arg15[%c0_50, %c0_51, %c0_52] : memref<1x1x128xf32, #tpu.memory_space<vmem>>, vector<1x1x128xf32>
    %92 = vector.shape_cast %91 : vector<1x1x128xf32> to vector<1x128xf32>
    %c0_53 = arith.constant 0 : index
    %c0_54 = arith.constant 0 : index
    %c0_55 = arith.constant 0 : index
    %93 = vector.load %arg16[%c0_53, %c0_54, %c0_55] : memref<1x1x128xf32, #tpu.memory_space<vmem>>, vector<1x1x128xf32>
    %94 = vector.shape_cast %93 : vector<1x1x128xf32> to vector<1x128xf32>
    %cst_56 = arith.constant dense<0.000000e+00> : vector<8xf32>
    %95 = vector.multi_reduction <add>, %90, %cst_56 [1] : vector<8x128xf32> to vector<8xf32>
    %96 = vector.shape_cast %95 : vector<8xf32> to vector<8x1xf32>
    %cst_57 = arith.constant 3.125000e-02 : f32
    %97 = vector.broadcast %cst_57 : f32 to vector<8x1xf32>
    %98 = arith.mulf %96, %97 : vector<8x1xf32>
    %99 = arith.mulf %90, %90 : vector<8x128xf32>
    %cst_58 = arith.constant dense<0.000000e+00> : vector<8xf32>
    %100 = vector.multi_reduction <add>, %99, %cst_58 [1] : vector<8x128xf32> to vector<8xf32>
    %101 = vector.shape_cast %100 : vector<8xf32> to vector<8x1xf32>
    %cst_59 = arith.constant 3.125000e-02 : f32
    %102 = vector.broadcast %cst_59 : f32 to vector<8x1xf32>
    %103 = arith.mulf %101, %102 : vector<8x1xf32>
    %104 = arith.mulf %98, %98 : vector<8x1xf32>
    %105 = arith.subf %103, %104 : vector<8x1xf32>
    %106 = vector.broadcast %98 : vector<8x1xf32> to vector<8x128xf32>
    %107 = arith.subf %90, %106 : vector<8x128xf32>
    %cst_60 = arith.constant 9.99999974E-6 : f32
    %108 = vector.broadcast %cst_60 : f32 to vector<8x1xf32>
    %109 = arith.addf %105, %108 : vector<8x1xf32>
    %110 = math.rsqrt %109 : vector<8x1xf32>
    %111 = vector.broadcast %110 : vector<8x1xf32> to vector<8x128xf32>
    %112 = arith.mulf %107, %111 : vector<8x128xf32>
    %113 = vector.broadcast %92 : vector<1x128xf32> to vector<8x128xf32>
    %114 = arith.mulf %112, %113 : vector<8x128xf32>
    %115 = vector.broadcast %94 : vector<1x128xf32> to vector<8x128xf32>
    %116 = arith.addf %114, %115 : vector<8x128xf32>
    %c0_61 = arith.constant 0 : index
    %c0_62 = arith.constant 0 : index
    %117 = vector.load %arg20[%c0_61, %c0_62] : memref<8x128xf32, #tpu.memory_space<vmem>>, vector<8x128xf32>
    tpu.vector_store %arg20[%c0_61, %c0_62], %116 {strides = array<i32>} : memref<8x128xf32, #tpu.memory_space<vmem>>, vector<8x128xf32>,
    %c1_i32 = arith.constant 1 : i32
    %118 = arith.cmpi eq, %arg1, %c1_i32 : i32
    %119 = arith.extui %118 : i1 to i32
    %c0_i32_63 = arith.constant 0 : i32
    %120 = arith.cmpi ne, %119, %c0_i32_63 : i32
    scf.if %120 {
      %121 = arith.truncf %116 : vector<8x128xf32> to vector<8x128xbf16>
      %c0_64 = arith.constant 0 : index
      %c0_65 = arith.constant 0 : index
      %122 = vector.load %arg17[%c0_64, %c0_65] : memref<128x128xbf16, #tpu.memory_space<vmem>>, vector<128x128xbf16>
      %cst_66 = arith.constant dense<0.000000e+00> : vector<8x128xf32>
      %123 = tpu.matmul %121, %122, %cst_66 {dimension_numbers = #tpu.dot_dimension_numbers<[1], [0], [0], [1], [0, 0, 1, 1], [], []>} : vector<8x128xbf16>, vector<128x128xbf16>, vector<8x128xf32> -> vector<8x128xf32>
      %c0_67 = arith.constant 0 : index
      %c0_68 = arith.constant 0 : index
      %124 = vector.load %arg18[%c0_67, %c0_68] : memref<1x128xf32, #tpu.memory_space<vmem>>, vector<1x128xf32>
      %125 = vector.broadcast %124 : vector<1x128xf32> to vector<8x128xf32>
      %126 = arith.addf %123, %125 : vector<8x128xf32>
      %c0_69 = arith.constant 0 : index
      %c0_70 = arith.constant 0 : index
      %c0_71 = arith.constant 0 : index
      %127 = vector.load %arg19[%c0_69, %c0_70, %c0_71] : memref<1x8x128xf32, #tpu.memory_space<vmem>>, vector<1x8x128xf32>
      %128 = vector.shape_cast %127 : vector<1x8x128xf32> to vector<8x128xf32>
      %129 = vector.shape_cast %126 : vector<8x128xf32> to vector<1x8x128xf32>
      tpu.vector_store %arg19[%c0_69, %c0_70, %c0_71], %129 {strides = array<i32>} : memref<1x8x128xf32, #tpu.memory_space<vmem>>, vector<1x8x128xf32>,
    } else {
    }
    return
  }
  func.func @transform_0(%arg0: i32, %arg1: i32) -> (i32, i32, i32) {
    %c0_i32 = arith.constant 0 : i32
    %c0_i32_0 = arith.constant 0 : i32
    %c0_i32_1 = arith.constant 0 : i32
    return %arg0, %c0_i32, %c0_i32_0 : i32, i32, i32
  }
  func.func @transform_1(%arg0: i32, %arg1: i32) -> (i32, i32) {
    %c0_i32 = arith.constant 0 : i32
    %c0_i32_0 = arith.constant 0 : i32
    %c0_i32_1 = arith.constant 0 : i32
    return %c0_i32, %c0_i32_0 : i32, i32
  }
  func.func @transform_2(%arg0: i32, %arg1: i32) -> (i32, i32) {
    %c0_i32 = arith.constant 0 : i32
    %c0_i32_0 = arith.constant 0 : i32
    %c0_i32_1 = arith.constant 0 : i32
    return %c0_i32, %c0_i32_0 : i32, i32
  }
  func.func @transform_3(%arg0: i32, %arg1: i32) -> (i32, i32, i32, i32) {
    %c0_i32 = arith.constant 0 : i32
    %c0_i32_0 = arith.constant 0 : i32
    %c0_i32_1 = arith.constant 0 : i32
    %c0_i32_2 = arith.constant 0 : i32
    return %arg1, %c0_i32, %c0_i32_0, %c0_i32_1 : i32, i32, i32, i32
  }
  func.func @transform_4(%arg0: i32, %arg1: i32) -> (i32, i32, i32, i32) {
    %c0_i32 = arith.constant 0 : i32
    %c0_i32_0 = arith.constant 0 : i32
    %c0_i32_1 = arith.constant 0 : i32
    %c0_i32_2 = arith.constant 0 : i32
    return %arg1, %c0_i32, %c0_i32_0, %c0_i32_1 : i32, i32, i32, i32
  }
  func.func @transform_5(%arg0: i32, %arg1: i32) -> (i32, i32, i32, i32) {
    %c0_i32 = arith.constant 0 : i32
    %c0_i32_0 = arith.constant 0 : i32
    %c0_i32_1 = arith.constant 0 : i32
    %c0_i32_2 = arith.constant 0 : i32
    return %arg1, %c0_i32, %c0_i32_0, %c0_i32_1 : i32, i32, i32, i32
  }
  func.func @transform_6(%arg0: i32, %arg1: i32) -> (i32, i32, i32) {
    %c0_i32 = arith.constant 0 : i32
    %c0_i32_0 = arith.constant 0 : i32
    %c0_i32_1 = arith.constant 0 : i32
    return %arg1, %c0_i32, %c0_i32_0 : i32, i32, i32
  }
  func.func @transform_7(%arg0: i32, %arg1: i32) -> (i32, i32, i32) {
    %c0_i32 = arith.constant 0 : i32
    %c0_i32_0 = arith.constant 0 : i32
    %c0_i32_1 = arith.constant 0 : i32
    return %arg1, %c0_i32, %c0_i32_0 : i32, i32, i32
  }
  func.func @transform_8(%arg0: i32, %arg1: i32) -> (i32, i32, i32) {
    %c0_i32 = arith.constant 0 : i32
    %c0_i32_0 = arith.constant 0 : i32
    %c0_i32_1 = arith.constant 0 : i32
    return %arg1, %c0_i32, %c0_i32_0 : i32, i32, i32
  }
  func.func @transform_9(%arg0: i32, %arg1: i32) -> (i32, i32, i32) {
    %c0_i32 = arith.constant 0 : i32
    %c0_i32_0 = arith.constant 0 : i32
    %c0_i32_1 = arith.constant 0 : i32
    return %arg1, %c0_i32, %c0_i32_0 : i32, i32, i32
  }
  func.func @transform_10(%arg0: i32, %arg1: i32) -> (i32, i32, i32) {
    %c0_i32 = arith.constant 0 : i32
    %c0_i32_0 = arith.constant 0 : i32
    %c0_i32_1 = arith.constant 0 : i32
    return %arg1, %c0_i32, %c0_i32_0 : i32, i32, i32
  }
  func.func @transform_11(%arg0: i32, %arg1: i32) -> (i32, i32, i32) {
    %c0_i32 = arith.constant 0 : i32
    %c0_i32_0 = arith.constant 0 : i32
    %c0_i32_1 = arith.constant 0 : i32
    return %arg1, %c0_i32, %c0_i32_0 : i32, i32, i32
  }
  func.func @transform_12(%arg0: i32, %arg1: i32) -> (i32, i32, i32) {
    %c0_i32 = arith.constant 0 : i32
    %c0_i32_0 = arith.constant 0 : i32
    %c0_i32_1 = arith.constant 0 : i32
    return %arg1, %c0_i32, %c0_i32_0 : i32, i32, i32
  }
  func.func @transform_13(%arg0: i32, %arg1: i32) -> (i32, i32, i32) {
    %c0_i32 = arith.constant 0 : i32
    %c0_i32_0 = arith.constant 0 : i32
    %c0_i32_1 = arith.constant 0 : i32
    return %arg1, %c0_i32, %c0_i32_0 : i32, i32, i32
  }
  func.func @transform_14(%arg0: i32, %arg1: i32) -> (i32, i32, i32) {
    %c0_i32 = arith.constant 0 : i32
    %c0_i32_0 = arith.constant 0 : i32
    %c0_i32_1 = arith.constant 0 : i32
    return %arg1, %c0_i32, %c0_i32_0 : i32, i32, i32
  }
  func.func @transform_15(%arg0: i32, %arg1: i32) -> (i32, i32) {
    %c0_i32 = arith.constant 0 : i32
    %c0_i32_0 = arith.constant 0 : i32
    %c0_i32_1 = arith.constant 0 : i32
    return %c0_i32, %c0_i32_0 : i32, i32
  }
  func.func @transform_16(%arg0: i32, %arg1: i32) -> (i32, i32) {
    %c0_i32 = arith.constant 0 : i32
    %c0_i32_0 = arith.constant 0 : i32
    %c0_i32_1 = arith.constant 0 : i32
    return %c0_i32, %c0_i32_0 : i32, i32
  }
  func.func @transform_17(%arg0: i32, %arg1: i32) -> (i32, i32, i32) {
    %c0_i32 = arith.constant 0 : i32
    %c0_i32_0 = arith.constant 0 : i32
    %c0_i32_1 = arith.constant 0 : i32
    return %arg0, %c0_i32, %c0_i32_0 : i32, i32, i32
  }
}

</mosaic_0001>

<bundles_post_ra>
// kernel: tpu_custom_call.1
= control target key start
LH: loop header
LB: loop body
LE: loop exit
PB: predicated region body
PF: predicated region fallthrough
CT: control target
= control target key end

     0   :  { %s5863_s0 = inlined_call_operand.hbm [shape: f32[2,8,128], index: 0, kind: input, shape index: {}]   ;;  %s5864_s1 = inlined_call_operand.vmem [shape: f32[1,128], index: 1, kind: input, shape index: {}]   ;;  %s5865_s2 = inlined_call_operand.hbm [shape: f32[1,128], index: 2, kind: input, shape index: {}]   ;;  %s5866_s3 = inlined_call_operand.hbm [shape: bf16[2,4,128,384], index: 3, kind: input, shape index: {}]   ;;  %s5867_s4 = inlined_call_operand.hbm [shape: f32[2,4,1,384], index: 4, kind: input, shape index: {}]   ;;  %s5868_s5 = inlined_call_operand.hbm [shape: bf16[2,4,128,128], index: 5, kind: input, shape index: {}]   ;;  %s5869_s6 = inlined_call_operand.vmem [shape: f32[2,1,128], index: 6, kind: input, shape index: {}]   ;;  %s5870_s7 = inlined_call_operand.hbm [shape: bf16[2,128,128], index: 7, kind: input, shape index: {}]   ;;  %s5871_s8 = inlined_call_operand.vmem [shape: f32[2,1,128], index: 8, kind: input, shape index: {}]   ;;  %s5872_s9 = inlined_call_operand.hbm [shape: bf16[2,128,128], index: 9, kind: input, shape index: {}]   ;;  %s5873_s10 = inlined_call_operand.vmem [shape: f32[2,1,128], index: 10, kind: input, shape index: {}]   ;;  %s5874_s11 = inlined_call_operand.vmem [shape: f32[2,1,128], index: 11, kind: input, shape index: {}]   ;;  %s5875_s12 = inlined_call_operand.vmem [shape: f32[2,1,128], index: 12, kind: input, shape index: {}]   ;;  %s5876_s13 = inlined_call_operand.vmem [shape: f32[2,1,128], index: 13, kind: input, shape index: {}]   ;;  %s5877_s14 = inlined_call_operand.vmem [shape: f32[2,1,128], index: 14, kind: input, shape index: {}]   ;;  %s5878_s15 = inlined_call_operand.hbm [shape: bf16[128,128], index: 15, kind: input, shape index: {}]   ;;  %s5879_s16 = inlined_call_operand.vmem [shape: f32[1,128], index: 16, kind: input, shape index: {}]   ;;  %s5880_s17 = inlined_call_operand.hbm [shape: f32[2,8,128], index: 17, kind: output, shape index: {}]  }
   0x1   :  { %5917 = sst [smem:[#allocation35_spill]] %s5863_s0 }
   0x2   :  { %5918 = sst [smem:[#allocation36_spill]] %s5864_s1 }
   0x3   :  { %5919 = sst [smem:[#allocation37_spill]] %s5865_s2 }
   0x4   :  { %5920 = sst [smem:[#allocation38_spill]] %s5866_s3 }
   0x5   :  { %5921 = sst [smem:[#allocation39_spill]] %s5867_s4 }
   0x6   :  { %5922 = sst [smem:[#allocation40_spill]] %s5868_s5 }
   0x7   :  { %5923 = sst [smem:[#allocation41_spill]] %s5869_s6 }
   0x8   :  { %5924 = sst [smem:[#allocation42_spill]] %s5870_s7 }
   0x9   :  { %5925 = sst [smem:[#allocation43_spill]] %s5871_s8 }
   0xa   :  { %5926 = sst [smem:[#allocation44_spill]] %s5872_s9 }
   0xb   :  { %5927 = sst [smem:[#allocation45_spill]] %s5873_s10 }
   0xc   :  { %5928 = sst [smem:[#allocation46_spill]] %s5874_s11 }
   0xd   :  { %5929 = sst [smem:[#allocation47_spill]] %s5875_s12 }
   0xe   :  { %5930 = sst [smem:[#allocation48_spill]] %s5876_s13 }
   0xf   :  { %5931 = sst [smem:[#allocation49_spill]] %s5877_s14 }
  0x10   :  { %5932 = sst [smem:[#allocation50_spill]] %s5878_s15 }
  0x11   :  { %5933 = sst [smem:[#allocation51_spill]] %s5879_s16 }
  0x12   :  { %5934 = sst [smem:[#allocation52_spill]] %s5880_s17 }
  0x13   :  { %22 = vsyncpa [#allocation4], 0 }
  0x14   :  { %24 = vsyncpa [#allocation4 + $0x1], 0 }
  0x15   :  { %25 = vsyncpa [#allocation7], 0 }
  0x16   :  { %26 = vsyncpa [#allocation5], 0 }
  0x17   :  { %28 = vsyncpa [#allocation5 + $0x1], 0  ;;  %s4916_s24 = smov 0   ;;  %s4918_s25 = smov 0  }
  0x18   :  { %s4920_s26 = smov 0   ;;  %s4922_s27 = smov 0  }
  0x19   :  { %s4924_s28 = smov 0   ;;  %s4926_s29 = smov 0  }
  0x1a   :  { %s4928_s0 = smov 0   ;;  %s4930_s30 = smov 0  }
  0x1b   :  { %s4932_s18 = smov 0   ;;  %s4934_s19 = smov 0  }
  0x1c   :  { %s4936_s1 = smov 0  }
  0x1d LB: > { %5935 = sst [smem:[#allocation20_spill]] %s4768_s25  ;;  %s3478_s20 = sadd.s32 4294967294, %s4804_s1   ;;  %s4804_s1 = sphi %s4936_s1, %s34_s1   ;;  %s4800_s19 = sphi %s4934_s19, %s6023_s19   ;;  %s4796_s18 = sphi %s4932_s18, %s6022_s18   ;;  %s4792_s30 = sphi %s4930_s30, %s6021_s30   ;;  %s4788_s0 = sphi %s4928_s0, %s6020_s0   ;;  %s4784_s29 = sphi %s4926_s29, %s6019_s29   ;;  %s4780_s28 = sphi %s4924_s28, %s6025_s28   ;;  %s4776_s27 = sphi %s4922_s27, %s6024_s27   ;;  %s4772_s26 = sphi %s4920_s26, %s6017_s26   ;;  %s4768_s25 = sphi %s4918_s25, %s6016_s25   ;;  %s4764_s24 = sphi %s4916_s24, %s6015_s24  }
  0x1e   : > { %5936 = sst [smem:[#allocation21_spill]] %s4772_s26  ;;  %s43_s21 = sadd.s32 1, %s4796_s18 }
  0x1f   : > { %5937 = sst [smem:[#allocation22_spill]] %s4776_s27  ;;  %p44_p0 = scmp.ge.s32.totalorder %s43_s21, 2 }
  0x20   : > { %5938 = sst [smem:[#allocation23_spill]] %s4784_s29  ;;  %s46_s22 = sadd.s32 1, %s4800_s19 }
  0x21   : > { %5939 = sst [smem:[#allocation24_spill]] %s4788_s0  ;;  %s53_s23 = sadd.s32 1, %s4784_s29 }
  0x22   : > { %5940 = sst [smem:[#allocation25_spill]] %s4792_s30  ;;  %p5887_p1 = scmp.ne.s32.totalorder %s4784_s29, %s4780_s28 }
  0x23   : > { %5941 = sst [smem:[#allocation26_spill]] %s4796_s18  ;;  %s6027_s21 = smov (%p44_p0, %s43_s21), 0 }
  0x24   : > { %5942 = sst [smem:[#allocation27_spill]] %s4800_s19  ;;  %s6029_s22 = smov (!%p44_p0, %s46_s22), %s4800_s19 }
  0x25   : > { %5943 = sst [smem:[#allocation28_spill]] %s4804_s1  ;;  %p61_p2 = scmp.eq.s32.totalorder %s4804_s1, 0 }
  0x26   : > { %5944 = sst [smem:[#allocation29_spill]] %s6027_s21  ;;  %p5888_p3 = scmp.ne.s32.totalorder %s4780_s28, %s4776_s27 }
  0x27   : > { %p48_p4 = scmp.ge.s32.totalorder %s6029_s22, 2  ;;  %s118_s17 = ssub.s32 %s4796_s18, %s6027_s21 }
  0x28   : > { %p4988_p5 = por %p61_p2, %p5887_p1  ;;  %p119_p6 = scmp.eq.s32.totalorder %s118_s17, 0 }
  0x29   : > { %s6031_s22 = smov (%p48_p4, %s6029_s22), 0  ;;  %s121_s16 = sadd.s32 1, %s4772_s26 }
  0x2a   : > { %5946 = sst [smem:[#allocation30_spill]] %s6031_s22  ;;  %p128_p7 = scmp.ne.s32.totalorder %s4772_s26, %s4768_s25 }
  0x2b   : > { %s50_s14 = ssub.s32 %s4800_s19, %s6031_s22  ;;  %p492_p8 = scmp.eq.s32.totalorder %s3478_s20, 3 }
  0x2c   : > { %p51_p9 = scmp.eq.s32.totalorder %s50_s14, 0  ;;  %p4999_p10 = por %p128_p7, %p61_p2 }
  0x2d   : > { %s5004_s21 = scalar_select %p119_p6, %s4772_s26, %s121_s16  }
  0x2e   : > { %s5007_s12 = scalar_select %p51_p9, %s4784_s29, %s53_s23  }
  0x2f   : > { %5948 = sst [smem:[#allocation31_spill]] %s5004_s21  ;;  %p5012_p11 = por %p492_p8, %p5888_p3 }
  0x30   : > { %5949 = sst [smem:[#allocation32_spill]] %s5007_s12  ;;  %p4122_p12 = scmp.lt.s32.totalorder %s4804_s1, 4 }
  0x31   : > { %s5950_s17 = scalar_select %p5012_p11, 1, 0 }
  0x32   : > { %s542_s11 = sand.u32 1, %s4804_s1   ;;  %s544_s22 = sand.u32 1, %s4784_s29  }
  0x33   : > { %5951 = sst [smem:[#allocation33_spill]] %s5950_s17  ;;  %s3483_s20 = sshll.u32 %s544_s22, 3 }
  0x34   : > { %s3484_s14 = sshll.u32 %s4800_s19, 7  ;;  %s5952_s6 = sld [smem:[#allocation35_spill]] }
  0x35   : > { %s546_s16 = scalar_lea.vmem [#allocation3], %s3483_s20  ;;  %p5027_p13 = pnand %p4122_p12, %p4988_p5 }
  0x36   : > { %s553_s23 = sshll.u32 %s546_s16, 4  ;;  %p5035_p0 = pnand %p4122_p12, %p4999_p10  ;;  %s5031_s23 = int_to_ptr.vmem [resolvable:$true] %s553_s23 }
  0x37   : > { %s5040_s10 = sand.u32 1, %s4772_s26   ;;  %s5042_s22 = scalar_lea.sflag [#allocation4], %s542_s11 }
  0x38   : > { %s5954_s8 = scalar_select %p5035_p0, 1, 0 }
  0x39   : > { %p4436_p4 = pneg %p5027_p13 }
  0x3a   : > { %s5023_s0 = scalar_lea.hbm %s5952_s6, %s3484_s14  ;;  %s4439_s13 = scalar_lea.hbm %s5952_s6, 256 }
  0x3b   : > { %s4434_s20 = scalar_lea.hbm %s5023_s0, 128  ;;  %p4440_p7 = scmp.lt.u32.totalorder %s5023_s0, %s5952_s6 }
  0x3c   : > { %p4435_p2 = scmp.ne.s32.totalorder %s5023_s0, %s4434_s20  ;;  %p4441_p8 = scmp.lt.u32.totalorder %s4439_s13, %s4434_s20 }
  0x3d   : > { %p4443_p10 = scmp.lt.u32.totalorder %s4434_s20, %s5023_s0 }
  0x3e   : > { %p4437_p5 = pnand %p4436_p4, %p4435_p2  ;;  %p4442_p9 = por %p4441_p8, %p4440_p7 }
  0x40   : > { %p4438_p6 = pneg %p4437_p5  ;;  %p4444_p12 = por %p4443_p10, %p4442_p9 }
  0x42   : > { %p4445_p1 = pnand %p4444_p12, %p4438_p6 }
  0x44   : > { %4448 = shalt.err (!%p4445_p1)
}
  0x45   : > { %s4449_s11 = scalar_lea.vmem %s5031_s23, 128  ;;  %s4806_s30 = smov [#allocation3]  }
  0x46   : > { %p4450_p2 = scmp.ne.s32.totalorder %s5031_s23, %s4449_s11  ;;  %s4454_s14 = sshll.u32 %s4806_s30, 4  ;;  %s4455_s14 = int_to_ptr.vmem [resolvable:$false] %s4454_s14 }
  0x47   : > { %s4456_s19 = scalar_lea.vmem %s4455_s14, 256  ;;  %p4457_p11 = scmp.lt.s32.totalorder %s5031_s23, %s4455_s14 }
  0x48   : > { %p4452_p5 = pnand %p4450_p2, %p4436_p4  ;;  %p4458_p7 = scmp.lt.s32.totalorder %s4456_s19, %s4449_s11 }
  0x4a   : > { %p4453_p3 = pneg %p4452_p5  ;;  %p4459_p8 = por %p4458_p7, %p4457_p11 }
  0x4c   : > { %p4460_p9 = pnand %p4459_p8, %p4453_p3 }
  0x4e   : > { %4463 = shalt.err (!%p4460_p9)
}
  0x4f   : > { %4100 = dma.hbm_to_vmem [thread:$0]  (!%p5027_p13), %s5023_s0, 128, %s5031_s23, %s5042_s22  }
  0x50   : > { %s4062_s20 = smul.u32 768, %s5040_s10  ;;  %s5955_s3 = sld [smem:[#allocation38_spill]] }
  0x51   : > { %s4063_s13 = smul.u32 12288, %s4796_s18  ;;  %p5084_p3 = pneg %p5035_p0 }
  0x52   : > { %s564_s12 = scalar_lea.vmem [#allocation8], %s4062_s20  ;;  %s4064_s19 = smul.u32 12, %s5040_s10 }
  0x53   : > { %s571_s11 = sshll.u32 %s564_s12, 4  ;;  %s5077_s11 = int_to_ptr.vmem [resolvable:$true] %s571_s11 }
  0x54   : > { %s5956_s0 = scalar_select %p5084_p3, 1, 0 }
  0x56   : > { %s5075_s14 = scalar_lea.hbm %s5955_s3, %s4063_s13  ;;  %s4469_s16 = scalar_lea.hbm %s5955_s3, 24576 }
  0x57   : > { %s4464_s6 = scalar_lea.hbm %s5075_s14, 12288  ;;  %p4470_p4 = scmp.lt.u32.totalorder %s5075_s14, %s5955_s3 }
  0x58   : > { %p4465_p1 = scmp.ne.s32.totalorder %s5075_s14, %s4464_s6  ;;  %p4471_p6 = scmp.lt.u32.totalorder %s4469_s16, %s4464_s6 }
  0x59   : > { %p4473_p12 = scmp.lt.u32.totalorder %s4464_s6, %s5075_s14 }
  0x5a   : > { %p4467_p11 = pnand %p5084_p3, %p4465_p1  ;;  %p4472_p10 = por %p4471_p6, %p4470_p4 }
  0x5c   : > { %p4468_p13 = pneg %p4467_p11  ;;  %p4474_p2 = por %p4473_p12, %p4472_p10 }
  0x5e   : > { %p4475_p5 = pnand %p4474_p2, %p4468_p13 }
  0x60   : > { %4478 = shalt.err (!%p4475_p5)
}
  0x61   : > { %s4479_s12 = scalar_lea.vmem %s5077_s11, 12288  ;;  %s4807_s23 = smov [#allocation8]  }
  0x62   : > { %p4480_p7 = scmp.ne.s32.totalorder %s5077_s11, %s4479_s12  ;;  %s4484_s13 = sshll.u32 %s4807_s23, 4  ;;  %s4485_s13 = int_to_ptr.vmem [resolvable:$false] %s4484_s13 }
  0x63   : > { %s4486_s20 = scalar_lea.vmem %s4485_s13, 24576  ;;  %p4487_p1 = scmp.lt.s32.totalorder %s5077_s11, %s4485_s13 }
  0x64   : > { %p4482_p8 = pnand %p4480_p7, %p5084_p3  ;;  %p4488_p11 = scmp.lt.s32.totalorder %s4486_s20, %s4479_s12 }
  0x66   : > { %p4483_p9 = pneg %p4482_p8  ;;  %p4489_p4 = por %p4488_p11, %p4487_p1 }
  0x68   : > { %p4490_p6 = pnand %p4489_p4, %p4483_p9 }
  0x6a   : > { %4493 = shalt.err (!%p4490_p6)
}
  0x6b   : > { %s4808_s6 = smov 192   ;;  %s4809_s16 = smov 12  }
  0x6c   : > { %4103 = dma.hbm_to_vmem [thread:$0]  (!%p5035_p0), %s5075_s14, 12288, %s5077_s11, %s5042_s22, %s4808_s6, %s4808_s6, %s4809_s16  }
  0x6d   : > { %s4065_s30 = smul.u32 192, %s4796_s18  ;;  %s585_s23 = scalar_lea.vmem [#allocation9], %s4064_s19 }
  0x6e   : > { %s592_s3 = sshll.u32 %s585_s23, 4  ;;  %s5957_s4 = sld [smem:[#allocation39_spill]]  ;;  %s5116_s3 = int_to_ptr.vmem [resolvable:$true] %s592_s3 }
  0x74   : > { %s5114_s20 = scalar_lea.hbm %s5957_s4, %s4065_s30  ;;  %s4499_s19 = scalar_lea.hbm %s5957_s4, 384 }
  0x75   : > { %s4494_s21 = scalar_lea.hbm %s5114_s20, 192  ;;  %p4500_p2 = scmp.lt.u32.totalorder %s5114_s20, %s5957_s4 }
  0x76   : > { %p4495_p13 = scmp.ne.s32.totalorder %s5114_s20, %s4494_s21  ;;  %p4501_p5 = scmp.lt.u32.totalorder %s4499_s19, %s4494_s21 }
  0x77   : > { %p4503_p8 = scmp.lt.u32.totalorder %s4494_s21, %s5114_s20 }
  0x78   : > { %p4497_p10 = pnand %p4495_p13, %p5084_p3  ;;  %p4502_p7 = por %p4501_p5, %p4500_p2 }
  0x7a   : > { %p4498_p12 = pneg %p4497_p10  ;;  %p4504_p9 = por %p4503_p8, %p4502_p7 }
  0x7c   : > { %p4505_p1 = pnand %p4504_p9, %p4498_p12 }
  0x7e   : > { %4508 = shalt.err (!%p4505_p1)
}
  0x7f   : > { %s4509_s30 = scalar_lea.vmem %s5116_s3, 192  ;;  %s4810_s23 = smov [#allocation9]  }
  0x80   : > { %p4510_p11 = scmp.ne.s32.totalorder %s5116_s3, %s4509_s30  ;;  %s4514_s13 = sshll.u32 %s4810_s23, 4  ;;  %s4515_s13 = int_to_ptr.vmem [resolvable:$false] %s4514_s13 }
  0x81   : > { %s4516_s12 = scalar_lea.vmem %s4515_s13, 384  ;;  %p4517_p13 = scmp.lt.s32.totalorder %s5116_s3, %s4515_s13 }
  0x82   : > { %p4512_p4 = pnand %p4510_p11, %p5084_p3  ;;  %p4518_p10 = scmp.lt.s32.totalorder %s4516_s12, %s4509_s30 }
  0x84   : > { %p4513_p6 = pneg %p4512_p4  ;;  %p4519_p2 = por %p4518_p10, %p4517_p13 }
  0x86   : > { %p4520_p5 = pnand %p4519_p2, %p4513_p6 }
  0x88   : > { %4523 = shalt.err (!%p4520_p5)
}
  0x89   : > { %s4811_s21 = smov 48   ;;  %s4812_s14 = smov 3  }
  0x8a   : > { %4106 = dma.hbm_to_vmem [thread:$0]  (!%p5035_p0), %s5114_s20, 192, %s5116_s3, %s5042_s22, %s4811_s21, %s4811_s21, %s4812_s14  }
  0x8b   : > { %s3487_s11 = sshll.u32 %s5040_s10, 8  ;;  %s3676_s19 = sshll.u32 %s4796_s18, 12 }
  0x8c   : > { %s5958_s5 = sld [smem:[#allocation40_spill]]  ;;  %s606_s23 = scalar_lea.vmem [#allocation10], %s3487_s11 }
  0x8d   : > { %s613_s13 = sshll.u32 %s606_s23, 4  ;;  %s5147_s13 = int_to_ptr.vmem [resolvable:$true] %s613_s13 }
  0x92   : > { %s5145_s30 = scalar_lea.hbm %s5958_s5, %s3676_s19  ;;  %s4529_s21 = scalar_lea.hbm %s5958_s5, 8192 }
  0x93   : > { %s4524_s12 = scalar_lea.hbm %s5145_s30, 4096  ;;  %p4530_p9 = scmp.lt.u32.totalorder %s5145_s30, %s5958_s5 }
  0x94   : > { %p4525_p12 = scmp.ne.s32.totalorder %s5145_s30, %s4524_s12  ;;  %p4531_p1 = scmp.lt.u32.totalorder %s4529_s21, %s4524_s12 }
  0x95   : > { %p4533_p4 = scmp.lt.u32.totalorder %s4524_s12, %s5145_s30 }
  0x96   : > { %p4527_p7 = pnand %p4525_p12, %p5084_p3  ;;  %p4532_p11 = por %p4531_p1, %p4530_p9 }
  0x98   : > { %p4528_p8 = pneg %p4527_p7  ;;  %p4534_p6 = por %p4533_p4, %p4532_p11 }
  0x9a   : > { %p4535_p13 = pnand %p4534_p6, %p4528_p8 }
  0x9c   : > { %4538 = shalt.err (!%p4535_p13)
}
  0x9d   : > { %s4539_s11 = scalar_lea.vmem %s5147_s13, 4096  ;;  %s4813_s6 = smov [#allocation10]  }
  0x9e   : > { %p4540_p10 = scmp.ne.s32.totalorder %s5147_s13, %s4539_s11  ;;  %s4544_s16 = sshll.u32 %s4813_s6, 4  ;;  %s4545_s16 = int_to_ptr.vmem [resolvable:$false] %s4544_s16 }
  0x9f   : > { %s4546_s23 = scalar_lea.vmem %s4545_s16, 8192  ;;  %p4547_p12 = scmp.lt.s32.totalorder %s5147_s13, %s4545_s16 }
  0xa0   : > { %p4542_p2 = pnand %p4540_p10, %p5084_p3  ;;  %p4548_p7 = scmp.lt.s32.totalorder %s4546_s23, %s4539_s11 }
  0xa2   : > { %p4543_p5 = pneg %p4542_p2  ;;  %p4549_p9 = por %p4548_p7, %p4547_p12 }
  0xa4   : > { %p4550_p1 = pnand %p4549_p9, %p4543_p5 }
  0xa6   : > { %4553 = shalt.err (!%p4550_p1)
}
  0xa7   : > { %s5890_s12 = smov 64   ;;  %s5892_s3 = smov 4  }
  0xa8   : > { %4109 = dma.hbm_to_vmem [thread:$0]  (!%p5035_p0), %s5145_s30, 4096, %s5147_s13, %s5042_s22, %s5890_s12, %s5890_s12, %s5892_s3  }
  0xa9   : > { %s5175_s20 = sadd.s32 4294967295, %s4804_s1   ;;  %p134_p11 = scmp.ne.s32.totalorder %s4768_s25, %s4764_s24 }
  0xaa   : > { %p5899_p8 = scmp.eq.s32.totalorder %s5175_s20, 0  ;;  %p486_p4 = scmp.eq.s32.totalorder %s5175_s20, 3 }
  0xab   : > { %p3479_p6 = scmp.ge.s32.totalorder %s4804_s1, 1  ;;  %p5959_p13 = scmp.ne.s32.totalorder %s4780_s28, %s4776_s27 }
  0xac   : > { %p5193_p2 = por %p134_p11, %p5899_p8  ;;  %p5962_p5 = scmp.ne.s32.totalorder %s4784_s29, %s4780_s28 }
  0xad   : > { %p5187_p10 = por %p5899_p8, %p5959_p13  ;;  %p499_p7 = scmp.lt.s32.totalorder %s4804_s1, 5 }
  0xae   : > { %s5961_s30 = scalar_select %p5193_p2, 1, 0 }
  0xaf   : > { %s5960_s21 = scalar_select %p5187_p10, 1, 0 }
  0xb0   : > { %p5200_p12 = por %p486_p4, %p5962_p5  ;;  %p5205_p9 = pnand %p3479_p6, %p499_p7 }
  0xb1   : > { %s4816_s14 = smov [#allocation6]   ;;  %s5895_s11 = sshll.u32 %s5040_s10, 6 }
  0xb2   : > { %s5963_s13 = scalar_select %p5200_p12, 1, 0 }
  0xb3   : > { %s5965_s24 = scalar_select %p5205_p9, 1, 0 }
  0xb4   : > { %5964 = sst [smem:[#allocation34_spill]] %s5963_s13  ;;  %s515_s19 = sshll.u32 %s4816_s14, 4  ;;  %s5209_s19 = int_to_ptr.vmem [resolvable:$true] %s515_s19 }
  0xb5   : > { %p4090_p1 = pneg %p5205_p9  ;;  %s3677_s6 = sshll.u32 %s4796_s18, 10 }
  0xb6   : > { %s633_s16 = scalar_lea.vmem [#allocation11], %s5895_s11  ;;  %s5967_s7 = sld [smem:[#allocation42_spill]] }
  0xb7   : > { %s640_s23 = sshll.u32 %s633_s16, 4  ;;  %p5219_p11 = pnand %p4090_p1, %p5899_p8  ;;  %s5230_s23 = int_to_ptr.vmem [resolvable:$true] %s640_s23 }
  0xb8   : > { %s4817_s5 = smov [#allocation13]   ;;  %s5968_s2 = sld [smem:[#allocation37_spill]] }
  0xb9   : > { %s5966_s12 = scalar_select %p5219_p11, 1, 0 }
  0xba   : > { %s5232_s29 = sshll.u32 %s4817_s5, 4  ;;  %p5904_p6 = pneg %p5219_p11  ;;  %s526_s29 = int_to_ptr.vmem [resolvable:$true] %s5232_s29 }
  0xbc   : > { %s5228_s14 = scalar_lea.hbm %s5967_s7, %s3677_s6 }
  0xbe   : > { %s4554_s26 = scalar_lea.hbm %s5968_s2, 16 }
  0xbf   : > { %p4555_p4 = scmp.ne.s32.totalorder %s5968_s2, %s4554_s26  ;;  %p4561_p7 = scmp.lt.u32.totalorder %s4554_s26, %s5968_s2 }
  0xc1   : > { %p4557_p13 = pnand %p5904_p6, %p4555_p4 }
  0xc3   : > { %p4558_p5 = pneg %p4557_p13 }
  0xc5   : > { %p4563_p1 = pnand %p4561_p7, %p4558_p5 }
  0xc7   : > { %4566 = shalt.err (!%p4563_p1)
}
  0xc8   : > { %s4567_s5 = scalar_lea.vmem %s5209_s19, 16  ;;  %s4574_s27 = scalar_lea.vmem %s5209_s19, 32 }
  0xc9   : > { %p4568_p8 = scmp.ne.s32.totalorder %s5209_s19, %s4567_s5  ;;  %p4575_p4 = scmp.lt.s32.totalorder %s5209_s19, %s5209_s19 }
  0xca   : > { %p4576_p13 = scmp.lt.s32.totalorder %s4574_s27, %s4567_s5 }
  0xcb   : > { %p4570_p12 = pnand %p4568_p8, %p5904_p6 }
  0xcc   : > { %p4577_p10 = por %p4576_p13, %p4575_p4 }
  0xcd   : > { %p4571_p2 = pneg %p4570_p12 }
  0xcf   : > { %p4578_p9 = pnand %p4577_p10, %p4571_p2 }
  0xd1   : > { %4581 = shalt.err (!%p4578_p9)
}
  0xd2   : > { %4093 = dma.hbm_to_vmem [thread:$0]  (!%p5219_p11), %s5968_s2, 16, %s5209_s19, [#allocation7]  }
  0xd3   : > { %s4582_s11 = scalar_lea.hbm %s5228_s14, 1024  ;;  %s4587_s3 = scalar_lea.hbm %s5967_s7, 2048 }
  0xd4   : > { %p4583_p8 = scmp.ne.s32.totalorder %s5228_s14, %s4582_s11  ;;  %p4588_p10 = scmp.lt.u32.totalorder %s5228_s14, %s5967_s7 }
  0xd5   : > { %p4589_p2 = scmp.lt.u32.totalorder %s4587_s3, %s4582_s11  ;;  %p4591_p7 = scmp.lt.u32.totalorder %s4582_s11, %s5228_s14 }
  0xd6   : > { %p4585_p12 = pnand %p4583_p8, %p5084_p3 }
  0xd7   : > { %p4590_p9 = por %p4589_p2, %p4588_p10 }
  0xd8   : > { %p4586_p5 = pneg %p4585_p12 }
  0xd9   : > { %p4592_p1 = por %p4591_p7, %p4590_p9 }
  0xdb   : > { %p4593_p4 = pnand %p4592_p1, %p4586_p5 }
  0xdd   : > { %4596 = shalt.err (!%p4593_p4)
}
  0xde   : > { %s4597_s19 = scalar_lea.vmem %s5230_s23, 1024  ;;  %s4818_s26 = smov [#allocation11]  }
  0xdf   : > { %p4598_p13 = scmp.ne.s32.totalorder %s5230_s23, %s4597_s19  ;;  %s4602_s17 = sshll.u32 %s4818_s26, 4  ;;  %s4603_s17 = int_to_ptr.vmem [resolvable:$false] %s4602_s17 }
  0xe0   : > { %s4604_s16 = scalar_lea.vmem %s4603_s17, 2048  ;;  %p4605_p6 = scmp.lt.s32.totalorder %s5230_s23, %s4603_s17 }
  0xe1   : > { %p4600_p8 = pnand %p4598_p13, %p5084_p3  ;;  %p4606_p11 = scmp.lt.s32.totalorder %s4604_s16, %s4597_s19 }
  0xe3   : > { %p4601_p12 = pneg %p4600_p8  ;;  %p4607_p10 = por %p4606_p11, %p4605_p6 }
  0xe5   : > { %p4608_p2 = pnand %p4607_p10, %p4601_p12 }
  0xe7   : > { %4611 = shalt.err (!%p4608_p2)
}
  0xe8   : > { %s5969_s11 = smov 4   ;;  %s5970_s4 = smov 64  }
  0xe9   : > { %4112 = dma.hbm_to_vmem [thread:$0]  (!%p5035_p0), %s5228_s14, 1024, %s5230_s23, %s5042_s22, %s5970_s4, %s5970_s4, %s5969_s11  }
  0xea   : > { %s5971_s15 = sld [smem:[#allocation50_spill]]  ;;  %p5972_p6 = scmp.ne.s32.totalorder %s5966_s12, 0 }
  0xec   : > { %p5973_p5 = pneg %p5972_p6 }
  0xf0   : > { %s4612_s27 = scalar_lea.hbm %s5971_s15, 1024 }
  0xf1   : > { %p4613_p11 = scmp.ne.s32.totalorder %s5971_s15, %s4612_s27  ;;  %p4619_p1 = scmp.lt.u32.totalorder %s4612_s27, %s5971_s15 }
  0xf3   : > { %p4615_p9 = pnand %p4613_p11, %p5973_p5 }
  0xf5   : > { %p4616_p7 = pneg %p4615_p9 }
  0xf7   : > { %p4621_p4 = pnand %p4619_p1, %p4616_p7 }
  0xf9   : > { %4624 = shalt.err (!%p4621_p4)
}
  0xfa   : > { %s4625_s23 = scalar_lea.vmem %s526_s29, 1024  ;;  %p5974_p8 = pmov %p5973_p5 }
  0xfb   : > { %p4626_p13 = scmp.ne.s32.totalorder %s526_s29, %s4625_s23  ;;  %p4633_p2 = scmp.lt.s32.totalorder %s526_s29, %s526_s29 }
  0xfc   : > { %p4634_p0 = scmp.lt.s32.totalorder %s4625_s23, %s4625_s23 }
  0xfd   : > { %p4628_p12 = pnand %p4626_p13, %p5974_p8 }
  0xfe   : > { %p4635_p3 = por %p4634_p0, %p4633_p2 }
  0xff   : > { %p4629_p10 = pneg %p4628_p12 }
 0x101   : > { %p4636_p5 = pnand %p4635_p3, %p4629_p10 }
 0x103   : > { %4639 = shalt.err (!%p4636_p5)
}
 0x104   : > { %4096 = dma.hbm_to_vmem [thread:$0]  (!%p5972_p6), %s5971_s15, 1024, %s526_s29, [#allocation7], %s5970_s4, %s5970_s4, %s5969_s11  }
 0x105   : > { %s5975_s9 = sld [smem:[#allocation44_spill]]  ;;  %s5976_s26 = sshll.u32 %s5040_s10, 6 }
 0x106   : > { %s660_s12 = scalar_lea.vmem [#allocation12], %s5976_s26  ;;  %p5977_p3 = scmp.ne.s32.totalorder %s5956_s0, 0 }
 0x107   : > { %s667_s17 = sshll.u32 %s660_s12, 4  ;;  %s5320_s17 = int_to_ptr.vmem [resolvable:$true] %s667_s17 }
 0x10b   : > { %s5316_s19 = scalar_lea.hbm %s5975_s9, %s3677_s6  ;;  %s4645_s14 = scalar_lea.hbm %s5975_s9, 2048 }
 0x10c   : > { %s4640_s16 = scalar_lea.hbm %s5316_s19, 1024  ;;  %p4646_p9 = scmp.lt.u32.totalorder %s5316_s19, %s5975_s9 }
 0x10d   : > { %p4641_p0 = scmp.ne.s32.totalorder %s5316_s19, %s4640_s16  ;;  %p4647_p7 = scmp.lt.u32.totalorder %s4645_s14, %s4640_s16 }
 0x10e   : > { %p4649_p4 = scmp.lt.u32.totalorder %s4640_s16, %s5316_s19 }
 0x10f   : > { %p4643_p11 = pnand %p4641_p0, %p5977_p3  ;;  %p4648_p1 = por %p4647_p7, %p4646_p9 }
 0x111   : > { %p4644_p6 = pneg %p4643_p11  ;;  %p4650_p13 = por %p4649_p4, %p4648_p1 }
 0x113   : > { %p4651_p8 = pnand %p4650_p13, %p4644_p6 }
 0x115   : > { %4654 = shalt.err (!%p4651_p8)
}
 0x116   : > { %s4655_s10 = scalar_lea.vmem %s5320_s17, 1024  ;;  %s4819_s5 = smov [#allocation12]  }
 0x117   : > { %p4656_p12 = scmp.ne.s32.totalorder %s5320_s17, %s4655_s10  ;;  %s4660_s27 = sshll.u32 %s4819_s5, 4  ;;  %s4661_s27 = int_to_ptr.vmem [resolvable:$false] %s4660_s27 }
 0x118   : > { %s4662_s26 = scalar_lea.vmem %s4661_s27, 2048  ;;  %p4663_p5 = scmp.lt.s32.totalorder %s5320_s17, %s4661_s27 }
 0x119   : > { %p4658_p10 = pnand %p4656_p12, %p5977_p3  ;;  %p4664_p0 = scmp.lt.s32.totalorder %s4662_s26, %s4655_s10 }
 0x11b   : > { %p4659_p2 = pneg %p4658_p10  ;;  %p4665_p11 = por %p4664_p0, %p4663_p5 }
 0x11d   : > { %p4666_p9 = pnand %p4665_p11, %p4659_p2 }
 0x11f   : > { %4669 = shalt.err (!%p4666_p9)
}
 0x120   : > { %p5978_p6 = scmp.ne.s32.totalorder %s5954_s8, 0  ;;  %p5979_p3 = scmp.ne.s32.totalorder %s5965_s24, 0 }
 0x121   : > { %s711_s0 = sand.u32 (!%p5979_p3), 1, %s5175_s20   ;;  %s5910_s12 = sand.u32 (!%p5979_p3), 1, %s4780_s28  }
 0x122   : > { %4115 = dma.hbm_to_vmem [thread:$0]  (!%p5978_p6), %s5316_s19, 1024, %s5320_s17, %s5042_s22, %s5970_s4, %s5970_s4, %s5969_s11  }
 0x123   : > { %709 = sbr.rel (%p5979_p3) target bundleno = 2823 (0xb07), region = 88  ;;  %s5353_s16 = sshll.u32 (!%p5979_p3), %s5910_s12, 3 }
 0x124   : > { %s712_s8 = scalar_lea.sflag (!%p5979_p3), [#allocation4], %s711_s0  ;;  %p5980_p7 = scmp.ne.s32.totalorder (!%p5979_p3), %s5960_s21, 0 }
 0x12a   : > { %4743 = dma.done.wait (%p5980_p7), %s712_s8, 128  }
 0x12b   : > { %4745 = vsyncadd (%p5980_p7), %s712_s8, 4294967168  ;;  %p5981_p1 = scmp.eq.s32.totalorder %s5175_s20, 0 }
 0x12d   : > { %4747 = dma.done.wait (%p5981_p1), [#allocation7], 16   ;;  %p5982_p4 = pmov %p5981_p1 }
 0x12e   : > { %s726_s22 = sand.u32 1, %s4768_s25   ;;  %p5983_p13 = scmp.ne.s32.totalorder %s5961_s30, 0 }
 0x12f   : > { %4749 = vsyncadd (%p5982_p4), [#allocation7], 4294967280  ;;  %s4066_s24 = smul.u32 768, %s726_s22 }
 0x131   : > { %s5365_s11 = scalar_lea.vmem [#allocation8], %s4066_s24 }
 0x132   : > { %4751 = dma.done.wait (%p5983_p13), %s712_s8, 18624  }
 0x133   : > { %4753 = vsyncadd (%p5983_p13), %s712_s8, 4294948672  ;;  %s4067_s21 = smul.u32 12, %s726_s22  ;;  %s3499_s4 = sshll.u32 %s726_s22, 8 }
 0x134   : > { %s3500_s19 = sshll.u32 %s726_s22, 6  ;;  %s5373_s23 = scalar_lea.vmem [#allocation10], %s3499_s4 }
 0x135   : > { %s5371_s17 = scalar_lea.vmem [#allocation9], %s4067_s21  ;;  %s5375_s14 = scalar_lea.vmem [#allocation11], %s3500_s19 }
 0x136   : > { %s5377_s6 = scalar_lea.vmem [#allocation12], %s3500_s19  ;;  %p5984_p8 = pmov %p5981_p1 }
 0x137   : > { %p5985_p12 = pmov %p5981_p1 }
 0x138   : > { %4755 = dma.done.wait (%p5984_p8), [#allocation7], 1024  }
 0x139   : > { %4757 = vsyncadd (%p5985_p12), [#allocation7], 4294966272  ;;  %s5986_s3 = sld [smem:[#allocation24_spill]]  ;;  %s5988_s8 = sld [smem:[#allocation43_spill]] }
 0x13a   : > { %s5989_s4 = sld [smem:[#allocation45_spill]]  ;;  %s5990_s2 = sld [smem:[#allocation46_spill]] }
 0x13b   : > { %s5991_s9 = sld [smem:[#allocation47_spill]]  ;;  %s5992_s1 = sld [smem:[#allocation48_spill]] }
 0x13c   : > { %s5993_s0 = sld [smem:[#allocation49_spill]] }
 0x13f   : > { %p865_p10 = scmp.lt.s32.totalorder %s5986_s3, 1  ;;  %p3504_p2 = scmp.ne.s32.totalorder %s5986_s3, 0 }
 0x140   : > { %s5994_s24 = scalar_lea.vmem (!%p3504_p2), [#allocation3], %s5353_s16  ;;  %s5995_s25 = sld [smem:[#allocation36_spill]] (!%p3504_p2)  ;;  %v3506_v13 = vld [vmem:[#allocation6] ss:$0 sm:$0xff] (!%p3504_p2) }
 0x141   : > { %s5385_s30 = scalar_select %p865_p10, %s5986_s3, 1 }
 0x142   : > { %890 = sbr.rel (%p3504_p2) target bundleno = 493 (0x1ed), region = 124  ;;  %v891_v0 = vld [vmem:[%s5994_s24] sm:$0xff] (!%p3504_p2) }
 0x143   : > { %s870_s22 = scalar_lea.vmem %s5988_s8, %s5385_s30  ;;  %s873_s19 = scalar_lea.vmem %s5989_s4, %s5385_s30  ;;  %894 = vadd.xlane.f32.xlu0 (!%p3504_p2), %v891_v0  ;;  %v897_v1 = vmul.f32 (!%p3504_p2), %v891_v0, %v891_v0 }
 0x144   : > { %s876_s7 = scalar_lea.vmem %s5990_s2, %s5385_s30  ;;  %s879_s15 = scalar_lea.vmem %s5991_s9, %s5385_s30 }
 0x145   : > { %s882_s27 = scalar_lea.vmem %s5992_s1, %s5385_s30  ;;  %s885_s20 = scalar_lea.vmem %s5993_s0, %s5385_s30 }
 0x146   : > { %s864_s8 = scalar_lea.vmem [#allocation14], %s5353_s16  ;;  %v3505_v11 = vld [vmem:[%s5995_s25] ss:$0 sm:$0xff] (!%p3504_p2) }
 0x147   : > { %898 = vadd.xlane.f32.xlu0 (!%p3504_p2), %v897_v1 }
 0x1d0   : > { %v895_v2 = vpop.xlane.xlu0 %894 }
 0x1d1   : > { %v896_v3 = vmul.f32 0.03125, %v895_v2 }
 0x1d3   : > { %v901_v5 = vmul.f32 %v896_v3, %v896_v3  ;;  %v903_v9 = vsub.f32 %v891_v0, %v896_v3 }
 0x1d4   : > { %v899_v4 = vpop.xlane.xlu0 %898 }
 0x1d5   : > { %v900_v6 = vmul.f32 0.03125, %v899_v4 }
 0x1d7   : > { %v902_v7 = vsub.f32 %v900_v6, %v901_v5 }
 0x1d9   : > { %v904_v8 = vadd.f32 1e-05, %v902_v7 }
 0x1db   : > { %4227 = vrsqrt.f32 %v904_v8 }
 0x1e5   : > { %v4228_v10 = vpop.eup %4227 }
 0x1e6   : > { %v906_v12 = vmul.f32 %v4228_v10, %v903_v9 }
 0x1e8   : > { %v913_v14 = vmul.f32 %v3505_v11, %v906_v12 }
 0x1ea   : > { %v920_v15 = vadd.f32 %v3506_v13, %v913_v14 }
 0x1ec   : > { %921 = vst [vmem:[#allocation2] sm:$0xff] %v920_v15 }
 0x1ed PF: > { %v4229_v16 = vld [vmem:[%s5365_s11 + $0x4] ss:$12 sps:$4 sm:$0xff]   ;;  %v4231_v17 = vld [vmem:[%s5365_s11] ss:$12 sps:$4 sm:$0xff]   ;;  %v4820_v18 = vmov 0   ;;  %v4821_v21 = vmov 0.0  }
 0x1ee   : > { %1280 = vmatprep.mubr.bf16.mxu0 %v4820_v18  ;;  %1248 = vmatprep.subr.bf16.mxu0 %v4229_v16  ;;  %v4232_v19 = vld [vmem:[%s5365_s11 + $0x1c] ss:$12 sps:$4 sm:$0xff]   ;;  %v4234_v20 = vld [vmem:[%s5365_s11 + $0x18] ss:$12 sps:$4 sm:$0xff]   ;;  %v4235_v22 = vld [vmem:[%s5365_s11 + $0x34] ss:$12 sps:$4 sm:$0xff]  }
 0x1ef   : > { %1249 = vmatpush1.bf16.msra.mxu0 %v4231_v17  ;;  %3794 = vmatprep.subr.bf16.mxu1 %v4821_v21  ;;  %vm4822_vm0 = vmmov 0   ;;  %v4237_v23 = vld [vmem:[%s5365_s11 + $0x30] ss:$12 sps:$4 sm:$0xff]   ;;  %v4238_v24 = vld [vmem:[%s5365_s11 + $0x4c] ss:$12 sps:$4 sm:$0xff]   ;;  %vm2184_vm1 = vcmask 1043456  }
 0x1f0   : > { %1250 = vmatprep.subr.bf16.mxu0 %v4232_v19  ;;  %3810 = vmatprep.mubr.msk.bf16.mxu1 %vm4822_vm0, %v4821_v21  ;;  %v4240_v25 = vld [vmem:[%s5365_s11 + $0x48] ss:$12 sps:$4 sm:$0xff]   ;;  %v4241_v26 = vld [vmem:[%s5365_s11 + $0x64] ss:$12 sps:$4 sm:$0xff]   ;;  %v4243_v27 = vld [vmem:[%s5365_s11 + $0x60] ss:$12 sps:$4 sm:$0xff]  }
 0x1f1   : > { %v4244_v28 = vld [vmem:[%s5365_s11 + $0x7c] ss:$12 sps:$4 sm:$0xff]   ;;  %v4246_v29 = vld [vmem:[%s5365_s11 + $0x78] ss:$12 sps:$4 sm:$0xff]   ;;  %v4247_v30 = vld [vmem:[%s5365_s11 + $0x94] ss:$12 sps:$4 sm:$0xff]  }
 0x1f2   : > { %v4249_v31 = vld [vmem:[%s5365_s11 + $0x90] ss:$12 sps:$4 sm:$0xff]   ;;  %v4250_v32 = vld [vmem:[%s5365_s11 + $0xac] ss:$12 sps:$4 sm:$0xff]   ;;  %v4252_v33 = vld [vmem:[%s5365_s11 + $0xa8] ss:$12 sps:$4 sm:$0xff]  }
 0x1f3   : > { %1251 = vmatpush1.bf16.msra.mxu0 %v4234_v20  ;;  %v922_v34 = vld [vmem:[#allocation2] sm:$0xff]  ;;  %v4261_v40 = vld [vmem:[%s5365_s11 + $0xf4] ss:$12 sps:$4 sm:$0xff]   ;;  %v4259_v41 = vld [vmem:[%s5365_s11 + $0xf0] ss:$12 sps:$4 sm:$0xff]   ;;  %vm2128_vm2 = vcmask 64512  }
 0x1f4   : > { %1252 = vmatprep.subr.bf16.mxu0 %v4235_v22  ;;  %v4255_v35 = vld [vmem:[%s5365_s11 + $0xc4] ss:$12 sps:$4 sm:$0xff]   ;;  %v5443_v36 = vpack.c.bf16 %v922_v34, %v922_v34  ;;  %v4253_v37 = vld [vmem:[%s5365_s11 + $0xc0] ss:$12 sps:$4 sm:$0xff]   ;;  %v4258_v38 = vld [vmem:[%s5365_s11 + $0xdc] ss:$12 sps:$4 sm:$0xff]  }
 0x1f5   : > { %v4256_v39 = vld [vmem:[%s5365_s11 + $0xd8] ss:$12 sps:$4 sm:$0xff]   ;;  %v4262_v43 = vld [vmem:[%s5365_s11 + $0x108] ss:$12 sps:$4 sm:$0xff]   ;;  %v4326_v46 = vld [vmem:[%s5365_s11 + $0x20] ss:$12 sps:$4 sm:$0xff]  }
 0x1f6   : > { %v4264_v42 = vld [vmem:[%s5365_s11 + $0x10c] ss:$12 sps:$4 sm:$0xff]   ;;  %v4325_v44 = vld [vmem:[%s5365_s11 + $0x8] ss:$12 sps:$4 sm:$0xff]   ;;  %v4267_v45 = vld [vmem:[%s5365_s11 + $0x124] ss:$12 sps:$4 sm:$0xff]  }
 0x1f7   : > { %1253 = vmatpush1.bf16.msra.mxu0 %v4237_v23  ;;  %3795 = vmatpush3.bf16.msra.mxu1 %v4325_v44  ;;  %v4265_v47 = vld [vmem:[%s5365_s11 + $0x120] ss:$12 sps:$4 sm:$0xff]   ;;  %v4270_v48 = vld [vmem:[%s5365_s11 + $0x13c] ss:$12 sps:$4 sm:$0xff]   ;;  %v4327_v49 = vld [vmem:[%s5365_s11 + $0x38] ss:$12 sps:$4 sm:$0xff]  }
 0x1f8   : > { %1254 = vmatprep.subr.bf16.mxu0 %v4238_v24  ;;  %3796 = vmatprep.subr.bf16.mxu1 %v4821_v21  ;;  %v4268_v50 = vld [vmem:[%s5365_s11 + $0x138] ss:$12 sps:$4 sm:$0xff]   ;;  %v4273_v51 = vld [vmem:[%s5365_s11 + $0x154] ss:$12 sps:$4 sm:$0xff]   ;;  %v4328_v52 = vld [vmem:[%s5365_s11 + $0x50] ss:$12 sps:$4 sm:$0xff]  }
 0x1f9   : > { %v4271_v53 = vld [vmem:[%s5365_s11 + $0x150] ss:$12 sps:$4 sm:$0xff]   ;;  %v4276_v54 = vld [vmem:[%s5365_s11 + $0x16c] ss:$12 sps:$4 sm:$0xff]   ;;  %v4329_v55 = vld [vmem:[%s5365_s11 + $0x68] ss:$12 sps:$4 sm:$0xff]  }
 0x1fa   : > { %v4274_v56 = vld [vmem:[%s5365_s11 + $0x168] ss:$12 sps:$4 sm:$0xff]   ;;  %v4279_v57 = vld [vmem:[%s5365_s11 + $0x184] ss:$12 sps:$4 sm:$0xff]   ;;  %v4330_v58 = vld [vmem:[%s5365_s11 + $0x80] ss:$12 sps:$4 sm:$0xff]  }
 0x1fb   : > { %1255 = vmatpush1.bf16.msra.mxu0 %v4240_v25  ;;  %3797 = vmatpush3.bf16.msra.mxu1 %v4326_v46  ;;  %v4277_v59 = vld [vmem:[%s5365_s11 + $0x180] ss:$12 sps:$4 sm:$0xff]   ;;  %v4282_v60 = vld [vmem:[%s5365_s11 + $0x19c] ss:$12 sps:$4 sm:$0xff]   ;;  %v4280_v61 = vld [vmem:[%s5365_s11 + $0x198] ss:$12 sps:$4 sm:$0xff]  }
 0x1fc   : > { %1256 = vmatprep.subr.bf16.mxu0 %v4241_v26  ;;  %3798 = vmatprep.subr.bf16.mxu1 %v4821_v21  ;;  %v4331_v62 = vld [vmem:[%s5365_s11 + $0x98] ss:$12 sps:$4 sm:$0xff]   ;;  %v4285_v63 = vld [vmem:[%s5365_s11 + $0x1b4] ss:$12 sps:$4 sm:$0xff]   ;;  %v4332_v0 = vld [vmem:[%s5365_s11 + $0xb0] ss:$12 sps:$4 sm:$0xff]  }
 0x1fd   : > { %v4283_v1 = vld [vmem:[%s5365_s11 + $0x1b0] ss:$12 sps:$4 sm:$0xff]   ;;  %v4288_v2 = vld [vmem:[%s5365_s11 + $0x1cc] ss:$12 sps:$4 sm:$0xff]   ;;  %v4333_v3 = vld [vmem:[%s5365_s11 + $0xc8] ss:$12 sps:$4 sm:$0xff]  }
 0x1fe   : > { %v4286_v4 = vld [vmem:[%s5365_s11 + $0x1c8] ss:$12 sps:$4 sm:$0xff]   ;;  %v4291_v5 = vld [vmem:[%s5365_s11 + $0x1e4] ss:$12 sps:$4 sm:$0xff]   ;;  %v4334_v6 = vld [vmem:[%s5365_s11 + $0xe0] ss:$12 sps:$4 sm:$0xff]  }
 0x1ff   : > { %1257 = vmatpush1.bf16.msra.mxu0 %v4243_v27  ;;  %3799 = vmatpush3.bf16.msra.mxu1 %v4327_v49  ;;  %v4289_v7 = vld [vmem:[%s5365_s11 + $0x1e0] ss:$12 sps:$4 sm:$0xff]   ;;  %v4294_v8 = vld [vmem:[%s5365_s11 + $0x1fc] ss:$12 sps:$4 sm:$0xff]   ;;  %v4335_v9 = vld [vmem:[%s5365_s11 + $0xf8] ss:$12 sps:$4 sm:$0xff]  }
 0x200   : > { %1258 = vmatprep.subr.bf16.mxu0 %v4244_v28  ;;  %3800 = vmatprep.subr.bf16.mxu1 %v4821_v21  ;;  %v4292_v10 = vld [vmem:[%s5365_s11 + $0x1f8] ss:$12 sps:$4 sm:$0xff]   ;;  %v4297_v11 = vld [vmem:[%s5365_s11 + $0x214] ss:$12 sps:$4 sm:$0xff]   ;;  %v4336_v12 = vld [vmem:[%s5365_s11 + $0x110] ss:$12 sps:$4 sm:$0xff]  }
 0x201   : > { %v4295_v13 = vld [vmem:[%s5365_s11 + $0x210] ss:$12 sps:$4 sm:$0xff]   ;;  %v4300_v14 = vld [vmem:[%s5365_s11 + $0x22c] ss:$12 sps:$4 sm:$0xff]   ;;  %v4337_v15 = vld [vmem:[%s5365_s11 + $0x128] ss:$12 sps:$4 sm:$0xff]  }
 0x202   : > { %v4298_v16 = vld [vmem:[%s5365_s11 + $0x228] ss:$12 sps:$4 sm:$0xff]   ;;  %v4303_v17 = vld [vmem:[%s5365_s11 + $0x244] ss:$12 sps:$4 sm:$0xff]   ;;  %v4338_v19 = vld [vmem:[%s5365_s11 + $0x140] ss:$12 sps:$4 sm:$0xff]  }
 0x203   : > { %1259 = vmatpush1.bf16.msra.mxu0 %v4246_v29  ;;  %3801 = vmatpush3.bf16.msra.mxu1 %v4328_v52  ;;  %v4301_v20 = vld [vmem:[%s5365_s11 + $0x240] ss:$12 sps:$4 sm:$0xff]   ;;  %v4306_v22 = vld [vmem:[%s5365_s11 + $0x25c] ss:$12 sps:$4 sm:$0xff]   ;;  %v4339_v23 = vld [vmem:[%s5365_s11 + $0x158] ss:$12 sps:$4 sm:$0xff]  }
 0x204   : > { %1260 = vmatprep.subr.bf16.mxu0 %v4247_v30  ;;  %3802 = vmatprep.subr.bf16.mxu1 %v4821_v21  ;;  %v4304_v24 = vld [vmem:[%s5365_s11 + $0x258] ss:$12 sps:$4 sm:$0xff]   ;;  %v4309_v25 = vld [vmem:[%s5365_s11 + $0x274] ss:$12 sps:$4 sm:$0xff]   ;;  %v4340_v26 = vld [vmem:[%s5365_s11 + $0x170] ss:$12 sps:$4 sm:$0xff]  }
 0x205   : > { %v4307_v27 = vld [vmem:[%s5365_s11 + $0x270] ss:$12 sps:$4 sm:$0xff]   ;;  %v4312_v28 = vld [vmem:[%s5365_s11 + $0x28c] ss:$12 sps:$4 sm:$0xff]   ;;  %v4341_v29 = vld [vmem:[%s5365_s11 + $0x188] ss:$12 sps:$4 sm:$0xff]  }
 0x206   : > { %v4310_v30 = vld [vmem:[%s5365_s11 + $0x288] ss:$12 sps:$4 sm:$0xff]   ;;  %v4343_v34 = vld [vmem:[%s5365_s11 + $0x1b8] ss:$12 sps:$4 sm:$0xff]   ;;  %v4352_v49 = vld [vmem:[%s5365_s11 + $0x290] ss:$12 sps:$4 sm:$0xff]  }
 0x207   : > { %1261 = vmatpush1.bf16.msra.mxu0 %v4249_v31  ;;  %3803 = vmatpush3.bf16.msra.mxu1 %v4329_v55  ;;  %v4342_v31 = vld [vmem:[%s5365_s11 + $0x1a0] ss:$12 sps:$4 sm:$0xff]   ;;  %v4347_v44 = vld [vmem:[%s5365_s11 + $0x218] ss:$12 sps:$4 sm:$0xff]   ;;  %v4349_v46 = vld [vmem:[%s5365_s11 + $0x248] ss:$12 sps:$4 sm:$0xff]  }
 0x208   : > { %1262 = vmatprep.subr.bf16.mxu0 %v4250_v32  ;;  %3804 = vmatprep.subr.bf16.mxu1 %v4821_v21  ;;  %v4313_v32 = vld [vmem:[%s5365_s11 + $0x2a0] ss:$12 sps:$4 sm:$0xff]   ;;  %v4355_v52 = vld [vmem:[%s5365_s11 + $0x2d8] ss:$12 sps:$4 sm:$0xff]   ;;  %s5996_s13 = sld [smem:[#allocation41_spill]]  ;;  %s6004_s2 = sld [smem:[#allocation24_spill]] }
 0x20b   : > { %1263 = vmatpush1.bf16.msra.mxu0 %v4252_v33  ;;  %3805 = vmatpush3.bf16.msra.mxu1 %v4330_v58  ;;  %v4318_v33 = vld [vmem:[%s5365_s11 + $0x2bc] ss:$12 sps:$4 sm:$0xff]  }
 0x20c   : > { %1457 = vmatprep.subr.bf16.mxu0 %v4255_v35  ;;  %3806 = vmatprep.subr.bf16.mxu1 %v4821_v21  ;;  %v4316_v35 = vld [vmem:[%s5365_s11 + $0x2b8] ss:$12 sps:$4 sm:$0xff]  }
 0x20e   : > { %1281 = vmatmul.mubr.bf16.vlgmr.msra.gmra.mrb[0].mxu0 %v5443_v36  ;;  %s5997_s12 = scalar_lea.vmem %s5996_s13, %s5385_s30  ;;  %p3662_p5 = scmp.ne.s32.totalorder %s6004_s2, 1 }
 0x20f   : > { %1458 = vmatpush1.bf16.msra.mxu0 %v4253_v37  ;;  %1489 = vmatprep.mubr.bf16.mxu0 %v4820_v18  ;;  %v4321_v37 = vld [vmem:[%s5365_s11 + $0x2d4] ss:$12 sps:$4 sm:$0xff]   ;;  %vm4824_vm3 = vmmov (!%p3662_p5), 0  }
 0x210   : > { %1459 = vmatprep.subr.bf16.mxu0 %v4258_v38  ;;  %3807 = vmatpush3.bf16.msra.mxu1 %v4331_v62  ;;  %v4344_v38 = vld [vmem:[%s5365_s11 + $0x1d0] ss:$12 sps:$4 sm:$0xff]  }
 0x211   : > { %3808 = vmatprep.subr.bf16.mxu1 %v4821_v21 }
 0x213   : > { %1460 = vmatpush1.bf16.msra.mxu0 %v4256_v39  ;;  %v4319_v39 = vld [vmem:[%s5365_s11 + $0x2d0] ss:$12 sps:$4 sm:$0xff]  }
 0x214   : > { %1461 = vmatprep.subr.bf16.mxu0 %v4261_v40  ;;  %3809 = vmatpush3.bf16.msra.mxu1 %v4332_v0  ;;  %v4324_v40 = vld [vmem:[%s5365_s11 + $0x2ec] ss:$12 sps:$4 sm:$0xff]  }
 0x215   : > { %3814 = vmatprep.subr.bf16.mxu1 %v4821_v21 }
 0x217   : > { %1462 = vmatpush1.bf16.msra.mxu0 %v4259_v41  ;;  %3811 = vmatmul.mubr.bf16.vlgmr.msra.gmra.mrb[0].mxu1 %v5443_v36  ;;  %v4345_v41 = vld [vmem:[%s5365_s11 + $0x1e8] ss:$12 sps:$4 sm:$0xff]  }
 0x218   : > { %1463 = vmatprep.subr.bf16.mxu0 %v4264_v42  ;;  %3815 = vmatpush3.bf16.msra.mxu1 %v4333_v3  ;;  %v4322_v42 = vld [vmem:[%s5365_s11 + $0x2e8] ss:$12 sps:$4 sm:$0xff]  }
 0x219   : > { %3830 = vmatprep.mubr.msk.bf16.mxu1 %vm4822_vm0, %v4821_v21  ;;  %3816 = vmatprep.subr.bf16.mxu1 %v4821_v21 }
 0x21b   : > { %1464 = vmatpush1.bf16.msra.mxu0 %v4262_v43  ;;  %v4346_v43 = vld [vmem:[%s5365_s11 + $0x200] ss:$12 sps:$4 sm:$0xff]  }
 0x21c   : > { %1465 = vmatprep.subr.bf16.mxu0 %v4267_v45  ;;  %3817 = vmatpush3.bf16.msra.mxu1 %v4334_v6  ;;  %v4348_v45 = vld [vmem:[%s5365_s11 + $0x230] ss:$12 sps:$4 sm:$0xff]  }
 0x21d   : > { %3818 = vmatprep.subr.bf16.mxu1 %v4821_v21 }
 0x21f   : > { %1466 = vmatpush1.bf16.msra.mxu0 %v4265_v47  ;;  %v4350_v47 = vld [vmem:[%s5365_s11 + $0x260] ss:$12 sps:$4 sm:$0xff]  }
 0x220   : > { %1467 = vmatprep.subr.bf16.mxu0 %v4270_v48  ;;  %3819 = vmatpush3.bf16.msra.mxu1 %v4335_v9  ;;  %v4351_v48 = vld [vmem:[%s5365_s11 + $0x278] ss:$12 sps:$4 sm:$0xff]  }
 0x221   : > { %3820 = vmatprep.subr.bf16.mxu1 %v4821_v21 }
 0x223   : > { %1468 = vmatpush1.bf16.msra.mxu0 %v4268_v50  ;;  %v4353_v50 = vld [vmem:[%s5365_s11 + $0x2a8] ss:$12 sps:$4 sm:$0xff]  }
 0x224   : > { %1469 = vmatprep.subr.bf16.mxu0 %v4273_v51  ;;  %3821 = vmatpush3.bf16.msra.mxu1 %v4336_v12  ;;  %v4354_v51 = vld [vmem:[%s5365_s11 + $0x2c0] ss:$12 sps:$4 sm:$0xff]  }
 0x225   : > { %3822 = vmatprep.subr.bf16.mxu1 %v4821_v21 }
 0x227   : > { %1470 = vmatpush1.bf16.msra.mxu0 %v4271_v53  ;;  %v4356_v53 = vld [vmem:[%s5365_s11 + $0x2f0] ss:$12 sps:$4 sm:$0xff]  }
 0x228   : > { %1471 = vmatprep.subr.bf16.mxu0 %v4276_v54  ;;  %3823 = vmatpush3.bf16.msra.mxu1 %v4337_v15  ;;  %v1060_v54 = vlaneseq }
 0x229   : > { %3824 = vmatprep.subr.bf16.mxu1 %v4821_v21 }
 0x22a   : > { %v1061_v55 = vshrl.u32 %v1060_v54, 7 }
 0x22b   : > { %1472 = vmatpush1.bf16.msra.mxu0 %v4274_v56 }
 0x22c   : > { %1666 = vmatprep.subr.bf16.mxu0 %v4279_v57  ;;  %3825 = vmatpush3.bf16.msra.mxu1 %v4338_v19  ;;  %v5578_v56 = vsub.s32 1, %v1061_v55  ;;  %v1052_v57 = vld [vmem:[%s5371_s17] sm:$0x7] }
 0x22d   : > { %3826 = vmatprep.subr.bf16.mxu1 %v4821_v21 }
 0x22e   : > { %1490 = vmatmul.mubr.bf16.vlgmr.msra.gmra.mrb[4].mxu0 %v5443_v36  ;;  %v1067_v58 = vrot.slane %v1052_v57, %v5578_v56 }
 0x22f   : > { %1667 = vmatpush1.bf16.msra.mxu0 %v4277_v59  ;;  %1698 = vmatprep.mubr.bf16.mxu0 %v4820_v18  ;;  %v5582_v59 = vsub.s32 0, %v1061_v55 }
 0x230   : > { %1668 = vmatprep.subr.bf16.mxu0 %v4282_v60  ;;  %3827 = vmatpush3.bf16.msra.mxu1 %v4339_v23 }
 0x231   : > { %3828 = vmatprep.subr.bf16.mxu1 %v4821_v21  ;;  %v1063_v0 = vrot.slane %v1052_v57, %v5582_v59 }
 0x233   : > { %1669 = vmatpush1.bf16.msra.mxu0 %v4280_v61 }
 0x234   : > { %1670 = vmatprep.subr.bf16.mxu0 %v4285_v63  ;;  %3829 = vmatpush3.bf16.msra.mxu1 %v4340_v26 }
 0x235   : > { %3834 = vmatprep.subr.bf16.mxu1 %v4821_v21 }
 0x237   : > { %1671 = vmatpush1.bf16.msra.mxu0 %v4283_v1  ;;  %3831 = vmatmul.mubr.bf16.vlgmr.msra.gmra.mrb[4].mxu1 %v5443_v36 }
 0x238   : > { %1672 = vmatprep.subr.bf16.mxu0 %v4288_v2  ;;  %3835 = vmatpush3.bf16.msra.mxu1 %v4341_v29 }
 0x239   : > { %3850 = vmatprep.mubr.msk.bf16.mxu1 %vm4822_vm0, %v4821_v21  ;;  %3836 = vmatprep.subr.bf16.mxu1 %v4821_v21 }
 0x23b   : > { %1673 = vmatpush1.bf16.msra.mxu0 %v4286_v4  ;;  %v1053_v4 = vld [vmem:[%s5371_s17 + $0x3] sm:$0x7] }
 0x23c   : > { %1674 = vmatprep.subr.bf16.mxu0 %v4291_v5  ;;  %3837 = vmatpush3.bf16.msra.mxu1 %v4342_v31  ;;  %v1079_v5 = vrot.slane %v1053_v4, %v5578_v56 }
 0x23d   : > { %3838 = vmatprep.subr.bf16.mxu1 %v4821_v21 }
 0x23f   : > { %1675 = vmatpush1.bf16.msra.mxu0 %v4289_v7 }
 0x240   : > { %1676 = vmatprep.subr.bf16.mxu0 %v4294_v8  ;;  %3839 = vmatpush3.bf16.msra.mxu1 %v4343_v34 }
 0x241   : > { %3840 = vmatprep.subr.bf16.mxu1 %v4821_v21 }
 0x243   : > { %1677 = vmatpush1.bf16.msra.mxu0 %v4292_v10  ;;  %v1075_v10 = vrot.slane %v1053_v4, %v5582_v59 }
 0x244   : > { %1678 = vmatprep.subr.bf16.mxu0 %v4297_v11  ;;  %3841 = vmatpush3.bf16.msra.mxu1 %v4344_v38 }
 0x245   : > { %3842 = vmatprep.subr.bf16.mxu1 %v4821_v21 }
 0x247   : > { %1679 = vmatpush1.bf16.msra.mxu0 %v4295_v13 }
 0x248   : > { %1680 = vmatprep.subr.bf16.mxu0 %v4300_v14  ;;  %3843 = vmatpush3.bf16.msra.mxu1 %v4345_v41  ;;  %v5610_v41 = vld [vmem:[%s5371_s17 + $0x9] sm:$0x7] }
 0x249   : > { %3844 = vmatprep.subr.bf16.mxu1 %v4821_v21 }
 0x24b   : > { %1681 = vmatpush1.bf16.msra.mxu0 %v4298_v16 }
 0x24c   : > { %1875 = vmatprep.subr.bf16.mxu0 %v4303_v17  ;;  %3845 = vmatpush3.bf16.msra.mxu1 %v4346_v43 }
 0x24d   : > { %3846 = vmatprep.subr.bf16.mxu1 %v4821_v21 }
 0x24e   : > { %1699 = vmatmul.mubr.bf16.vlgmr.msra.gmra.mrb[8].mxu0 %v5443_v36 }
 0x24f   : > { %1876 = vmatpush1.bf16.msra.mxu0 %v4301_v20  ;;  %1907 = vmatprep.mubr.bf16.mxu0 %v4820_v18  ;;  %v4315_v18 = vld [vmem:[%s5365_s11 + $0x2a4] ss:$12 sps:$4 sm:$0xff]  }
 0x250   : > { %1877 = vmatprep.subr.bf16.mxu0 %v4306_v22  ;;  %3847 = vmatpush3.bf16.msra.mxu1 %v4347_v44  ;;  %v5595_v20 = vld [vmem:[%s5371_s17 + $0x6] sm:$0x7]  ;;  %v5597_v22 = vsub.s32 2, %v1061_v55 }
 0x251   : > { %3848 = vmatprep.subr.bf16.mxu1 %v4821_v21  ;;  %v1091_v23 = vrot.slane %v5595_v20, %v5578_v56  ;;  %v1087_v29 = vrot.slane %v5595_v20, %v5582_v59 }
 0x252   : > { %v1083_v43 = vrot.slane %v1053_v4, %v5597_v22 }
 0x253   : > { %1878 = vmatpush1.bf16.msra.mxu0 %v4304_v24  ;;  %v1071_v24 = vrot.slane %v1052_v57, %v5597_v22 }
 0x254   : > { %1879 = vmatprep.subr.bf16.mxu0 %v4309_v25  ;;  %3849 = vmatpush3.bf16.msra.mxu1 %v4348_v45 }
 0x255   : > { %3854 = vmatprep.subr.bf16.mxu1 %v4821_v21 }
 0x257   : > { %1880 = vmatpush1.bf16.msra.mxu0 %v4307_v27  ;;  %3851 = vmatmul.mubr.bf16.vlgmr.msra.gmra.mrb[8].mxu1 %v5443_v36 }
 0x258   : > { %1881 = vmatprep.subr.bf16.mxu0 %v4312_v28  ;;  %3855 = vmatpush3.bf16.msra.mxu1 %v4349_v46 }
 0x259   : > { %3870 = vmatprep.mubr.msk.bf16.mxu1 %vm4822_vm0, %v4821_v21  ;;  %3856 = vmatprep.subr.bf16.mxu1 %v4821_v21 }
 0x25b   : > { %1882 = vmatpush1.bf16.msra.mxu0 %v4310_v30 }
 0x25c   : > { %1883 = vmatprep.subr.bf16.mxu0 %v4315_v18  ;;  %3857 = vmatpush3.bf16.msra.mxu1 %v4350_v47 }
 0x25d   : > { %3858 = vmatprep.subr.bf16.mxu1 %v4821_v21 }
 0x25f   : > { %1884 = vmatpush1.bf16.msra.mxu0 %v4313_v32 }
 0x260   : > { %1885 = vmatprep.subr.bf16.mxu0 %v4318_v33  ;;  %3859 = vmatpush3.bf16.msra.mxu1 %v4351_v48  ;;  %v1099_v48 = vrot.slane %v5610_v41, %v5582_v59 }
 0x261   : > { %3860 = vmatprep.subr.bf16.mxu1 %v4821_v21 }
 0x263   : > { %1886 = vmatpush1.bf16.msra.mxu0 %v4316_v35 }
 0x264   : > { %1887 = vmatprep.subr.bf16.mxu0 %v4321_v37  ;;  %3861 = vmatpush3.bf16.msra.mxu1 %v4352_v49 }
 0x265   : > { %3862 = vmatprep.subr.bf16.mxu1 %v4821_v21 }
 0x267   : > { %1888 = vmatpush1.bf16.msra.mxu0 %v4319_v39 }
 0x268   : > { %1889 = vmatprep.subr.bf16.mxu0 %v4324_v40  ;;  %3863 = vmatpush3.bf16.msra.mxu1 %v4353_v50 }
 0x269   : > { %3864 = vmatprep.subr.bf16.mxu1 %v4821_v21 }
 0x26b   : > { %1890 = vmatpush1.bf16.msra.mxu0 %v4322_v42  ;;  %v1103_v42 = vrot.slane %v5610_v41, %v5578_v56 }
 0x26c   : > { %3874 = vmatprep.subr.bf16.mxu0 %v4821_v21  ;;  %3865 = vmatpush3.bf16.msra.mxu1 %v4354_v51 }
 0x26d   : > { %3866 = vmatprep.subr.bf16.mxu1 %v4821_v21 }
 0x26e   : > { %1908 = vmatmul.mubr.bf16.vlgmr.msra.gmra.mrb[12].mxu0 %v5443_v36 }
 0x26f   : > { %3876 = vmatprep.mubr.msk.bf16.mxu0 %vm4822_vm0, %v4821_v21 }
 0x270   : > { %3867 = vmatpush3.bf16.msra.mxu1 %v4355_v52 }
 0x271   : > { %3868 = vmatprep.subr.bf16.mxu1 %v4821_v21 }
 0x274   : > { %3869 = vmatpush3.bf16.msra.mxu1 %v4356_v53 }
 0x275   : > { %3880 = vmatprep.subr.bf16.mxu1 %v4821_v21 }
 0x277   : > { %3871 = vmatmul.mubr.bf16.vlgmr.msra.gmra.mrb[12].mxu1 %v5443_v36 }
 0x278   : > { %3882 = vmatprep.mubr.msk.bf16.mxu1 %vm4822_vm0, %v4821_v21 }
 0x2e1   : > { %v1282_v60 = vpop.f32.mrb[0].mxu0 }
 0x2e2   : > { %v1284_v61 = vpop.f32.mrb[1].mxu0  ;;  %v1283_v2 = vadd.f32 %v1282_v60, %v1063_v0 }
 0x2e3   : > { %v1285_v62 = vadd.f32 %v1284_v61, %v1067_v58  ;;  %v1286_v63 = vpop.f32.mrb[2].mxu0 }
 0x2e4   : > { %v1287_v36 = vpop.f32.mrb[3].mxu0  ;;  %v1956_v3 = vpack.c.bf16 %v1283_v2, %v1283_v2 }
 0x2e5   : > { %v1960_v1 = vpack.c.bf16 %v1285_v62, %v1285_v62 }
 0x2e7   : > { %3875 = vmatpush3.bf16.xpose.msra.mxu0 %v1960_v1 }
 0x2e8   : > { %3886 = vmatprep.subr.bf16.mxu0 %v4821_v21 }
 0x2ea   : > { %v1323_v14 = vpop.f32.mrb[0].mxu1 }
 0x2eb   : > { %v3812_v16 = vpop.f32.mrb[1].mxu1  ;;  %v1324_v18 = vadd.f32 %v1323_v14, %v1071_v24 }
 0x2ec   : > { %v1326_v17 = vpop.f32.mrb[2].mxu1 }
 0x2ed   : > { %v3813_v19 = vpop.f32.mrb[3].mxu1  ;;  %v2177_v33 = vpack.c.bf16 %v1324_v18, %v1324_v18 }
 0x2ee   : > { %3877 = vmatmul.mubr.bf16.vlgmr.msra.gmra.mrb[16].mxu0 %v1956_v3 }
 0x2ef   : > { %3888 = vmatprep.mubr.msk.bf16.mxu0 %vm4822_vm0, %v4821_v21  ;;  %v2186_v37 = vsel %vm2184_vm1, %v2177_v33, 0 }
 0x301   : > { %v1491_v6 = vpop.f32.mrb[4].mxu0 }
 0x302   : > { %v1493_v7 = vpop.f32.mrb[5].mxu0  ;;  %v1492_v13 = vadd.f32 %v1491_v6, %v1075_v10 }
 0x303   : > { %v1494_v8 = vadd.f32 %v1493_v7, %v1079_v5  ;;  %v1495_v9 = vpop.f32.mrb[6].mxu0 }
 0x304   : > { %v1496_v11 = vpop.f32.mrb[7].mxu0  ;;  %v1957_v15 = vpack.c.bf16 %v1492_v13, %v1492_v13 }
 0x305   : > { %v1961_v12 = vpack.c.bf16 %v1494_v8, %v1494_v8 }
 0x307   : > { %3881 = vmatpush3.bf16.xpose.msra.mxu1 %v1961_v12 }
 0x308   : > { %3892 = vmatprep.subr.bf16.mxu1 %v4821_v21 }
 0x30a   : > { %v1532_v34 = vpop.f32.mrb[4].mxu1 }
 0x30b   : > { %v3832_v38 = vpop.f32.mrb[5].mxu1  ;;  %v1533_v50 = vadd.f32 %v1532_v34, %v1083_v43 }
 0x30c   : > { %v1535_v39 = vpop.f32.mrb[6].mxu1 }
 0x30d   : > { %v3833_v40 = vpop.f32.mrb[7].mxu1  ;;  %v2178_v53 = vpack.c.bf16 %v1533_v50, %v1533_v50 }
 0x30e   : > { %3883 = vmatmul.mubr.bf16.vlgmr.msra.gmra.mrb[16].mxu1 %v1957_v15 }
 0x30f   : > { %3894 = vmatprep.mubr.msk.bf16.mxu1 %vm4822_vm0, %v4821_v21  ;;  %v2232_v56 = vsel %vm2184_vm1, %v2178_v53, 0 }
 0x321   : > { %v1700_v25 = vpop.f32.mrb[8].mxu0 }
 0x322   : > { %v1702_v26 = vpop.f32.mrb[9].mxu0  ;;  %v1701_v32 = vadd.f32 %v1700_v25, %v1087_v29 }
 0x323   : > { %v1703_v27 = vadd.f32 %v1702_v26, %v1091_v23  ;;  %v1704_v28 = vpop.f32.mrb[10].mxu0 }
 0x324   : > { %v1705_v30 = vpop.f32.mrb[11].mxu0  ;;  %v1958_v35 = vpack.c.bf16 %v1701_v32, %v1701_v32 }
 0x325   : > { %v1962_v31 = vpack.c.bf16 %v1703_v27, %v1703_v27 }
 0x327   : > { %3887 = vmatpush3.bf16.xpose.msra.mxu0 %v1962_v31 }
 0x328   : > { %3898 = vmatprep.subr.bf16.mxu0 %v4821_v21 }
 0x32a   : > { %v5618_v54 = vpop.f32.mrb[8].mxu1 }
 0x32b   : > { %v3852_v57 = vpop.f32.mrb[9].mxu1 }
 0x32c   : > { %v1744_v58 = vpop.f32.mrb[10].mxu1 }
 0x32d   : > { %v3853_v60 = vpop.f32.mrb[11].mxu1 }
 0x32e   : > { %3889 = vmatmul.mubr.bf16.vlgmr.msra.gmra.mrb[20].mxu0 %v1958_v35 }
 0x32f   : > { %3899 = vmatpush3.bf16.msra.mxu0 %v2186_v37  ;;  %3900 = vmatprep.mubr.msk.bf16.mxu0 %vm4822_vm0, %v4821_v21 }
 0x330   : > { %3910 = vmatprep.subr.bf16.mxu0 %v4821_v21 }
 0x341   : > { %v1909_v44 = vpop.f32.mrb[12].mxu0 }
 0x342   : > { %v1911_v45 = vpop.f32.mrb[13].mxu0  ;;  %v1910_v52 = vadd.f32 %v1909_v44, %v1099_v48 }
 0x343   : > { %v1912_v46 = vadd.f32 %v1911_v45, %v1103_v42  ;;  %v1913_v47 = vpop.f32.mrb[14].mxu0 }
 0x344   : > { %v1914_v49 = vpop.f32.mrb[15].mxu0  ;;  %v1959_v55 = vpack.c.bf16 %v1910_v52, %v1910_v52 }
 0x345   : > { %v1963_v51 = vpack.c.bf16 %v1912_v46, %v1912_v46  ;;  %v1095_v49 = vrot.slane %v5595_v20, %v5597_v22  ;;  %v1107_v20 = vrot.slane %v5610_v41, %v5597_v22 }
 0x347   : > { %3893 = vmatpush3.bf16.xpose.msra.mxu1 %v1963_v51  ;;  %v1742_v50 = vadd.f32 %v5618_v54, %v1095_v49  ;;  %v4387_v49 = vld [vmem:[%s5373_s23 + $0xf0] sm:$0xff]  }
 0x348   : > { %3904 = vmatprep.subr.bf16.mxu1 %v4821_v21 }
 0x349   : > { %v2179_v52 = vpack.c.bf16 %v1742_v50, %v1742_v50  ;;  %v4388_v50 = vld [vmem:[%s5373_s23 + $0xf8] sm:$0xff]  }
 0x34a   : > { %v5624_v59 = vpop.f32.mrb[12].mxu1 }
 0x34b   : > { %v3872_v61 = vpop.f32.mrb[13].mxu1  ;;  %v1951_v54 = vadd.f32 %v5624_v59, %v1107_v20 }
 0x34c   : > { %v1953_v62 = vpop.f32.mrb[14].mxu1 }
 0x34d   : > { %v3873_v63 = vpop.f32.mrb[15].mxu1  ;;  %v2180_v60 = vpack.c.bf16 %v1951_v54, %v1951_v54 }
 0x34e   : > { %3895 = vmatmul.mubr.bf16.vlgmr.msra.gmra.mrb[20].mxu1 %v1959_v55 }
 0x34f   : > { %3905 = vmatpush3.bf16.msra.mxu1 %v2232_v56  ;;  %3906 = vmatprep.mubr.msk.bf16.mxu1 %vm4822_vm0, %v4821_v21  ;;  %v2278_v56 = vsel %vm2184_vm1, %v2179_v52, 0  ;;  %v2324_v63 = vsel %vm2184_vm1, %v2180_v60, 0 }
 0x350   : > { %3916 = vmatprep.subr.bf16.mxu1 %v4821_v21 }
 0x3c1   : > { %v1998_v0 = vpop.f32.mrb[16].mxu0 }
 0x3c2   : > { %v2124_v36 = vmul.f32 0.35355338, %v1998_v0  ;;  %v3878_v1 = vpop.f32.mrb[17].mxu0  ;;  %v4357_v0 = vld [vmem:[%s5373_s23] sm:$0xff]  }
 0x3c3   : > { %v2001_v2 = vpop.f32.mrb[18].mxu0  ;;  %v4358_v1 = vld [vmem:[%s5373_s23 + $0x8] sm:$0xff]  }
 0x3c4   : > { %v3879_v3 = vpop.f32.mrb[19].mxu0  ;;  %v2129_v4 = vsel %vm2128_vm2, %v2124_v36, -inf  ;;  %v4359_v2 = vld [vmem:[%s5373_s23 + $0x10] sm:$0xff]  }
 0x3c5   : > { %2130 = vmax.xlane.f32.xlu0 %v2129_v4  ;;  %v4360_v3 = vld [vmem:[%s5373_s23 + $0x18] sm:$0xff]   ;;  %v4361_v4 = vld [vmem:[%s5373_s23 + $0x20] sm:$0xff]  }
 0x3e1   : > { %v2038_v5 = vpop.f32.mrb[16].mxu1 }
 0x3e2   : > { %v2125_v6 = vmul.f32 0.35355338, %v2038_v5  ;;  %v3884_v7 = vpop.f32.mrb[17].mxu1 }
 0x3e3   : > { %v2041_v8 = vpop.f32.mrb[18].mxu1  ;;  %v4363_v7 = vld [vmem:[%s5373_s23 + $0x30] sm:$0xff]  }
 0x3e4   : > { %v3885_v9 = vpop.f32.mrb[19].mxu1  ;;  %v2132_v10 = vsel %vm2128_vm2, %v2125_v6, -inf  ;;  %v4364_v8 = vld [vmem:[%s5373_s23 + $0x38] sm:$0xff]  }
 0x3e5   : > { %2133 = vmax.xlane.f32.xlu0 %v2132_v10 }
 0x401   : > { %v2078_v11 = vpop.f32.mrb[20].mxu0 }
 0x402   : > { %v2126_v12 = vmul.f32 0.35355338, %v2078_v11  ;;  %v3890_v13 = vpop.f32.mrb[21].mxu0  ;;  %v4365_v11 = vld [vmem:[%s5373_s23 + $0x40] sm:$0xff]  }
 0x403   : > { %v2081_v14 = vpop.f32.mrb[22].mxu0  ;;  %v4366_v13 = vld [vmem:[%s5373_s23 + $0x48] sm:$0xff]  }
 0x404   : > { %v3891_v15 = vpop.f32.mrb[23].mxu0  ;;  %v2135_v16 = vsel %vm2128_vm2, %v2126_v12, -inf  ;;  %v4367_v14 = vld [vmem:[%s5373_s23 + $0x50] sm:$0xff]  }
 0x405   : > { %2136 = vmax.xlane.f32.xlu1 %v2135_v16  ;;  %v4368_v15 = vld [vmem:[%s5373_s23 + $0x58] sm:$0xff]   ;;  %v4369_v16 = vld [vmem:[%s5373_s23 + $0x60] sm:$0xff]  }
 0x421   : > { %v2118_v17 = vpop.f32.mrb[20].mxu1 }
 0x422   : > { %v2127_v19 = vmul.f32 0.35355338, %v2118_v17  ;;  %v3896_v23 = vpop.f32.mrb[21].mxu1  ;;  %v4370_v17 = vld [vmem:[%s5373_s23 + $0x68] sm:$0xff]  }
 0x423   : > { %v2121_v24 = vpop.f32.mrb[22].mxu1  ;;  %v4372_v23 = vld [vmem:[%s5373_s23 + $0x78] sm:$0xff]  }
 0x424   : > { %v3897_v25 = vpop.f32.mrb[23].mxu1  ;;  %v2138_v26 = vsel %vm2128_vm2, %v2127_v19, -inf }
 0x425   : > { %2139 = vmax.xlane.f32.xlu1 %v2138_v26  ;;  %v4373_v25 = vld [vmem:[%s5373_s23 + $0x80] sm:$0xff]  }
 0x452   : > { %v2131_v27 = vpop.xlane.xlu0 %2130 }
 0x453   : > { %v2141_v28 = vsub.f32 %v2124_v36, %v2131_v27 }
 0x455   : > { %v2145_v29 = vmul.f32 1.442695, %v2141_v28 }
 0x457   : > { %4405 = vpow2.f32 %v2145_v29 }
 0x461   : > { %v4406_v30 = vpop.eup %4405 }
 0x462   : > { %v2153_v18 = vsel %vm2128_vm2, %v4406_v30, 0.0 }
 0x463   : > { %2154 = vadd.xlane.f32.xlu0 %v2153_v18  ;;  %v4375_v18 = vld [vmem:[%s5373_s23 + $0x90] sm:$0xff]  }
 0x472   : > { %v2134_v31 = vpop.xlane.xlu0 %2133 }
 0x473   : > { %v2142_v32 = vsub.f32 %v2125_v6, %v2134_v31  ;;  %v4362_v6 = vld [vmem:[%s5373_s23 + $0x28] sm:$0xff]   ;;  %v4376_v31 = vld [vmem:[%s5373_s23 + $0x98] sm:$0xff]  }
 0x475   : > { %v2147_v33 = vmul.f32 1.442695, %v2142_v32  ;;  %v4377_v32 = vld [vmem:[%s5373_s23 + $0xa0] sm:$0xff]  }
 0x477   : > { %4407 = vpow2.f32 %v2147_v33  ;;  %v4378_v33 = vld [vmem:[%s5373_s23 + $0xa8] sm:$0xff]  }
 0x481   : > { %v4408_v34 = vpop.eup %4407 }
 0x482   : > { %v2156_v35 = vsel %vm2128_vm2, %v4408_v34, 0.0 }
 0x483   : > { %2157 = vadd.xlane.f32.xlu1 %v2156_v35  ;;  %v4380_v35 = vld [vmem:[%s5373_s23 + $0xb8] sm:$0xff]  }
 0x492   : > { %v2137_v37 = vpop.xlane.xlu1 %2136 }
 0x493   : > { %v2143_v38 = vsub.f32 %v2126_v12, %v2137_v37 }
 0x495   : > { %v2149_v39 = vmul.f32 1.442695, %v2143_v38  ;;  %v4381_v38 = vld [vmem:[%s5373_s23 + $0xc0] sm:$0xff]  }
 0x497   : > { %4409 = vpow2.f32 %v2149_v39 }
 0x4a1   : > { %v4410_v40 = vpop.eup %4409 }
 0x4a2   : > { %v2159_v42 = vsel %vm2128_vm2, %v4410_v40, 0.0 }
 0x4a3   : > { %2160 = vadd.xlane.f32.xlu0 %v2159_v42 }
 0x4b2   : > { %v2140_v43 = vpop.xlane.xlu1 %2139 }
 0x4b3   : > { %v2144_v44 = vsub.f32 %v2127_v19, %v2140_v43  ;;  %v4371_v19 = vld [vmem:[%s5373_s23 + $0x70] sm:$0xff]  }
 0x4b5   : > { %v2151_v45 = vmul.f32 1.442695, %v2144_v44  ;;  %v4382_v44 = vld [vmem:[%s5373_s23 + $0xc8] sm:$0xff]  }
 0x4b7   : > { %4411 = vpow2.f32 %v2151_v45  ;;  %v4383_v45 = vld [vmem:[%s5373_s23 + $0xd0] sm:$0xff]  }
 0x4c1   : > { %v4412_v46 = vpop.eup %4411 }
 0x4c2   : > { %v2162_v47 = vsel %vm2128_vm2, %v4412_v46, 0.0 }
 0x4c3   : > { %2163 = vadd.xlane.f32.xlu1 %v2162_v47  ;;  %v4385_v47 = vld [vmem:[%s5373_s23 + $0xe0] sm:$0xff]  }
 0x4f0   : > { %v2155_v48 = vpop.xlane.xlu0 %2154 }
 0x4f1   : > { %4413 = vrcp.f32 %v2155_v48  ;;  %v4386_v48 = vld [vmem:[%s5373_s23 + $0xe8] sm:$0xff]  }
 0x4fb   : > { %v4414_v51 = vpop.eup %4413 }
 0x4fc   : > { %v2169_v53 = vmul.f32 %v4414_v51, %v4406_v30  ;;  %v4374_v30 = vld [vmem:[%s5373_s23 + $0x88] sm:$0xff]  }
 0x4fe   : > { %v2173_v55 = vpack.c.bf16 %v2169_v53, %v2169_v53 }
 0x500   : > { %3901 = vmatmul.mubr.msk.bf16.vlgmr.msra.gmra.mrb[24].mxu0 %vm2128_vm2, %v2173_v55 }
 0x501   : > { %3911 = vmatpush3.bf16.msra.mxu0 %v2278_v56  ;;  %3912 = vmatprep.mubr.msk.bf16.mxu0 %vm4822_vm0, %v4821_v21 }
 0x502   : > { %3922 = vmatprep.subr.bf16.mxu0 %v4821_v21 }
 0x510   : > { %v2158_v57 = vpop.xlane.xlu1 %2157 }
 0x511   : > { %4415 = vrcp.f32 %v2158_v57 }
 0x51b   : > { %v4416_v58 = vpop.eup %4415 }
 0x51c   : > { %v2170_v61 = vmul.f32 %v4416_v58, %v4408_v34  ;;  %v4379_v34 = vld [vmem:[%s5373_s23 + $0xb0] sm:$0xff]  }
 0x51e   : > { %v2174_v62 = vpack.c.bf16 %v2170_v61, %v2170_v61  ;;  %v4389_v61 = vld [vmem:[%s5375_s14] sm:$0xff]  }
 0x520   : > { %3907 = vmatmul.mubr.msk.bf16.vlgmr.msra.gmra.mrb[24].mxu1 %vm2128_vm2, %v2174_v62 }
 0x521   : > { %3917 = vmatpush3.bf16.msra.mxu1 %v2324_v63  ;;  %3918 = vmatprep.mubr.msk.bf16.mxu1 %vm4822_vm0, %v4821_v21 }
 0x522   : > { %3942 = vmatprep.subr.bf16.mxu1 %v4821_v21 }
 0x530   : > { %v2161_v22 = vpop.xlane.xlu0 %2160 }
 0x531   : > { %4417 = vrcp.f32 %v2161_v22 }
 0x53b   : > { %v4418_v41 = vpop.eup %4417 }
 0x53c   : > { %v2171_v59 = vmul.f32 %v4418_v41, %v4410_v40 }
 0x53e   : > { %v2175_v36 = vpack.c.bf16 %v2171_v59, %v2171_v59 }
 0x540   : > { %3913 = vmatmul.mubr.msk.bf16.vlgmr.msra.gmra.mrb[28].mxu0 %vm2128_vm2, %v2175_v36 }
 0x541   : > { %3923 = vmatpush3.bf16.msra.mxu0 %v4357_v0  ;;  %3938 = vmatprep.mubr.msk.bf16.mxu0 %vm4822_vm0, %v4821_v21 }
 0x542   : > { %3924 = vmatprep.subr.bf16.mxu0 %v4821_v21 }
 0x545   : > { %3925 = vmatpush3.bf16.msra.mxu0 %v4358_v1 }
 0x546   : > { %3926 = vmatprep.subr.bf16.mxu0 %v4821_v21 }
 0x549   : > { %3927 = vmatpush3.bf16.msra.mxu0 %v4359_v2 }
 0x54a   : > { %3928 = vmatprep.subr.bf16.mxu0 %v4821_v21 }
 0x54d   : > { %3929 = vmatpush3.bf16.msra.mxu0 %v4360_v3 }
 0x54e   : > { %3930 = vmatprep.subr.bf16.mxu0 %v4821_v21 }
 0x550   : > { %v2164_v5 = vpop.xlane.xlu1 %2163 }
 0x551   : > { %4419 = vrcp.f32 %v2164_v5  ;;  %3931 = vmatpush3.bf16.msra.mxu0 %v4361_v4 }
 0x552   : > { %3932 = vmatprep.subr.bf16.mxu0 %v4821_v21 }
 0x555   : > { %3933 = vmatpush3.bf16.msra.mxu0 %v4362_v6 }
 0x556   : > { %3934 = vmatprep.subr.bf16.mxu0 %v4821_v21 }
 0x559   : > { %3935 = vmatpush3.bf16.msra.mxu0 %v4363_v7 }
 0x55a   : > { %3936 = vmatprep.subr.bf16.mxu0 %v4821_v21 }
 0x55b   : > { %v4420_v9 = vpop.eup %4419 }
 0x55c   : > { %v2172_v10 = vmul.f32 %v4420_v9, %v4412_v46  ;;  %v4384_v46 = vld [vmem:[%s5373_s23 + $0xd8] sm:$0xff]   ;;  %v3639_v9 = vld [vmem:[%s5997_s12] ss:$0 sm:$0xff] }
 0x55d   : > { %3937 = vmatpush3.bf16.msra.mxu0 %v4364_v8 }
 0x55e   : > { %v2176_v12 = vpack.c.bf16 %v2172_v10, %v2172_v10  ;;  %3962 = vmatprep.subr.bf16.mxu0 %v4821_v21 }
 0x560   : > { %3919 = vmatmul.mubr.msk.bf16.vlgmr.msra.gmra.mrb[28].mxu1 %vm2128_vm2, %v2176_v12 }
 0x561   : > { %3943 = vmatpush3.bf16.msra.mxu1 %v4365_v11  ;;  %3958 = vmatprep.mubr.msk.bf16.mxu1 %vm4822_vm0, %v4821_v21 }
 0x562   : > { %3944 = vmatprep.subr.bf16.mxu1 %v4821_v21 }
 0x565   : > { %3945 = vmatpush3.bf16.msra.mxu1 %v4366_v13 }
 0x566   : > { %3946 = vmatprep.subr.bf16.mxu1 %v4821_v21 }
 0x569   : > { %3947 = vmatpush3.bf16.msra.mxu1 %v4367_v14 }
 0x56a   : > { %3948 = vmatprep.subr.bf16.mxu1 %v4821_v21 }
 0x56d   : > { %3949 = vmatpush3.bf16.msra.mxu1 %v4368_v15  ;;  %v4425_v15 = vld [vmem:[#allocation2] sm:$0xff] }
 0x56e   : > { %3950 = vmatprep.subr.bf16.mxu1 %v4821_v21 }
 0x571   : > { %3951 = vmatpush3.bf16.msra.mxu1 %v4369_v16 }
 0x572   : > { %3952 = vmatprep.subr.bf16.mxu1 %v4821_v21 }
 0x575   : > { %3953 = vmatpush3.bf16.msra.mxu1 %v4370_v17 }
 0x576   : > { %3954 = vmatprep.subr.bf16.mxu1 %v4821_v21 }
 0x579   : > { %3955 = vmatpush3.bf16.msra.mxu1 %v4371_v19  ;;  %v4390_v19 = vld [vmem:[%s5375_s14 + $0x8] sm:$0xff]  }
 0x57a   : > { %3956 = vmatprep.subr.bf16.mxu1 %v4821_v21 }
 0x57d   : > { %3957 = vmatpush3.bf16.msra.mxu1 %v4372_v23  ;;  %v4391_v23 = vld [vmem:[%s5375_s14 + $0x10] sm:$0xff]  }
 0x57e   : > { %3982 = vmatprep.subr.bf16.mxu1 %v4821_v21 }
 0x5d3   : > { %v2222_v24 = vpop.f32.mrb[24].mxu0 }
 0x5d4   : > { %v2366_v26 = vpack.c.bf16 %v2222_v24, %v2222_v24  ;;  %v3902_v27 = vpop.f32.mrb[25].mxu0  ;;  %v4392_v24 = vld [vmem:[%s5375_s14 + $0x18] sm:$0xff]  }
 0x5d5   : > { %v2225_v28 = vpop.f32.mrb[26].mxu0  ;;  %v4395_v27 = vld [vmem:[%s5375_s14 + $0x30] sm:$0xff]  }
 0x5d6   : > { %v3903_v29 = vpop.f32.mrb[27].mxu0  ;;  %3939 = vmatmul.mubr.bf16.vlgmr.msra.gmra.mrb[32].mxu0 %v2366_v26  ;;  %v4394_v26 = vld [vmem:[%s5375_s14 + $0x28] sm:$0xff]   ;;  %v4396_v28 = vld [vmem:[%s5375_s14 + $0x38] sm:$0xff]  }
 0x5d7   : > { %3963 = vmatpush3.bf16.msra.mxu0 %v4373_v25  ;;  %3978 = vmatprep.mubr.msk.bf16.mxu0 %vm4822_vm0, %v4821_v21  ;;  %v4393_v25 = vld [vmem:[%s5375_s14 + $0x20] sm:$0xff]  }
 0x5d8   : > { %3964 = vmatprep.subr.bf16.mxu0 %v4821_v21  ;;  %v4397_v29 = vld [vmem:[%s5377_s6] sm:$0xff]  }
 0x5db   : > { %3965 = vmatpush3.bf16.msra.mxu0 %v4374_v30  ;;  %v4398_v30 = vld [vmem:[%s5377_s6 + $0x8] sm:$0xff]  }
 0x5dc   : > { %3966 = vmatprep.subr.bf16.mxu0 %v4821_v21 }
 0x5df   : > { %3967 = vmatpush3.bf16.msra.mxu0 %v4375_v18  ;;  %v4399_v18 = vld [vmem:[%s5377_s6 + $0x10] sm:$0xff]  }
 0x5e0   : > { %3968 = vmatprep.subr.bf16.mxu0 %v4821_v21 }
 0x5e3   : > { %3969 = vmatpush3.bf16.msra.mxu0 %v4376_v31  ;;  %v4400_v31 = vld [vmem:[%s5377_s6 + $0x18] sm:$0xff]  }
 0x5e4   : > { %3970 = vmatprep.subr.bf16.mxu0 %v4821_v21 }
 0x5e7   : > { %3971 = vmatpush3.bf16.msra.mxu0 %v4377_v32  ;;  %v4401_v32 = vld [vmem:[%s5377_s6 + $0x20] sm:$0xff]  }
 0x5e8   : > { %3972 = vmatprep.subr.bf16.mxu0 %v4821_v21 }
 0x5eb   : > { %3973 = vmatpush3.bf16.msra.mxu0 %v4378_v33  ;;  %v4402_v33 = vld [vmem:[%s5377_s6 + $0x28] sm:$0xff]  }
 0x5ec   : > { %3974 = vmatprep.subr.bf16.mxu0 %v4821_v21 }
 0x5ef   : > { %3975 = vmatpush3.bf16.msra.mxu0 %v4379_v34 }
 0x5f0   : > { %3976 = vmatprep.subr.bf16.mxu0 %v4821_v21 }
 0x5f3   : > { %v2268_v37 = vpop.f32.mrb[24].mxu1  ;;  %3977 = vmatpush3.bf16.msra.mxu0 %v4380_v35 }
 0x5f4   : > { %v2367_v39 = vpack.c.bf16 %v2268_v37, %v2268_v37  ;;  %v3908_v40 = vpop.f32.mrb[25].mxu1  ;;  %4002 = vmatprep.subr.bf16.mxu0 %v4821_v21 }
 0x5f5   : > { %v2271_v42 = vpop.f32.mrb[26].mxu1 }
 0x5f6   : > { %v3909_v43 = vpop.f32.mrb[27].mxu1  ;;  %3959 = vmatmul.mubr.bf16.vlgmr.msra.gmra.mrb[32].mxu1 %v2367_v39 }
 0x5f7   : > { %3983 = vmatpush3.bf16.msra.mxu1 %v4381_v38  ;;  %3998 = vmatprep.mubr.msk.bf16.mxu1 %vm4822_vm0, %v4821_v21 }
 0x5f8   : > { %3984 = vmatprep.subr.bf16.mxu1 %v4821_v21 }
 0x5fb   : > { %3985 = vmatpush3.bf16.msra.mxu1 %v4382_v44 }
 0x5fc   : > { %3986 = vmatprep.subr.bf16.mxu1 %v4821_v21 }
 0x5ff   : > { %3987 = vmatpush3.bf16.msra.mxu1 %v4383_v45  ;;  %v3640_v45 = vld [vmem:[%s876_s7] ss:$0 sm:$0xff] }
 0x600   : > { %3988 = vmatprep.subr.bf16.mxu1 %v4821_v21 }
 0x603   : > { %3989 = vmatpush3.bf16.msra.mxu1 %v4384_v46 }
 0x604   : > { %3990 = vmatprep.subr.bf16.mxu1 %v4821_v21 }
 0x607   : > { %3991 = vmatpush3.bf16.msra.mxu1 %v4385_v47  ;;  %v3641_v47 = vld [vmem:[%s879_s15] ss:$0 sm:$0xff] }
 0x608   : > { %3992 = vmatprep.subr.bf16.mxu1 %v4821_v21 }
 0x60b   : > { %3993 = vmatpush3.bf16.msra.mxu1 %v4386_v48 }
 0x60c   : > { %3994 = vmatprep.subr.bf16.mxu1 %v4821_v21 }
 0x60f   : > { %3995 = vmatpush3.bf16.msra.mxu1 %v4387_v49 }
 0x610   : > { %3996 = vmatprep.subr.bf16.mxu1 %v4821_v21 }
 0x613   : > { %v2314_v51 = vpop.f32.mrb[28].mxu0  ;;  %3997 = vmatpush3.bf16.msra.mxu1 %v4388_v50 }
 0x614   : > { %v2368_v52 = vpack.c.bf16 %v2314_v51, %v2314_v51  ;;  %v3914_v53 = vpop.f32.mrb[29].mxu0  ;;  %4022 = vmatprep.subr.bf16.mxu1 %v4821_v21  ;;  %v4403_v51 = vld [vmem:[%s5377_s6 + $0x30] sm:$0xff]  }
 0x615   : > { %v2317_v55 = vpop.f32.mrb[30].mxu0  ;;  %v3642_v53 = vld [vmem:[%s870_s22] ss:$0 sm:$0xff] }
 0x616   : > { %v3915_v56 = vpop.f32.mrb[31].mxu0  ;;  %3979 = vmatmul.mubr.bf16.vlgmr.msra.gmra.mrb[36].mxu0 %v2368_v52  ;;  %v4404_v52 = vld [vmem:[%s5377_s6 + $0x38] sm:$0xff]  }
 0x617   : > { %4018 = vmatprep.mubr.msk.bf16.mxu0 %vm4822_vm0, %v4821_v21  ;;  %4003 = vmatpush3.bf16.msra.mxu0 %v4389_v61 }
 0x618   : > { %4004 = vmatprep.subr.bf16.mxu0 %v4821_v21 }
 0x61b   : > { %4005 = vmatpush3.bf16.msra.mxu0 %v4390_v19  ;;  %v4429_v19 = vld [vmem:[#allocation13 + $0x18] sm:$0xff] (!%p3662_p5)  }
 0x61c   : > { %4006 = vmatprep.subr.bf16.mxu0 %v4821_v21 }
 0x61f   : > { %4007 = vmatpush3.bf16.msra.mxu0 %v4391_v23  ;;  %v4430_v23 = vld [vmem:[#allocation13 + $0x20] sm:$0xff] (!%p3662_p5)  }
 0x620   : > { %4008 = vmatprep.subr.bf16.mxu0 %v4821_v21 }
 0x623   : > { %4009 = vmatpush3.bf16.msra.mxu0 %v4392_v24  ;;  %v4431_v24 = vld [vmem:[#allocation13 + $0x28] sm:$0xff] (!%p3662_p5)  }
 0x624   : > { %4010 = vmatprep.subr.bf16.mxu0 %v4821_v21 }
 0x627   : > { %4011 = vmatpush3.bf16.msra.mxu0 %v4393_v25  ;;  %v4432_v25 = vld [vmem:[#allocation13 + $0x30] sm:$0xff] (!%p3662_p5)  }
 0x628   : > { %4012 = vmatprep.subr.bf16.mxu0 %v4821_v21 }
 0x62b   : > { %4013 = vmatpush3.bf16.msra.mxu0 %v4394_v26  ;;  %v4433_v26 = vld [vmem:[#allocation13 + $0x38] sm:$0xff] (!%p3662_p5)  }
 0x62c   : > { %4014 = vmatprep.subr.bf16.mxu0 %v4821_v21 }
 0x62f   : > { %4015 = vmatpush3.bf16.msra.mxu0 %v4395_v27 }
 0x630   : > { %4016 = vmatprep.subr.bf16.mxu0 %v4821_v21 }
 0x633   : > { %v2360_v57 = vpop.f32.mrb[28].mxu1  ;;  %4017 = vmatpush3.bf16.msra.mxu0 %v4396_v28 }
 0x634   : > { %v2369_v20 = vpack.c.bf16 %v2360_v57, %v2360_v57  ;;  %v3920_v54 = vpop.f32.mrb[29].mxu1 }
 0x635   : > { %v2363_v58 = vpop.f32.mrb[30].mxu1 }
 0x636   : > { %v3921_v60 = vpop.f32.mrb[31].mxu1  ;;  %3999 = vmatmul.mubr.bf16.vlgmr.msra.gmra.mrb[36].mxu1 %v2369_v20 }
 0x637   : > { %4038 = vmatprep.mubr.msk.bf16.mxu1 %vm4822_vm0, %v4821_v21  ;;  %4023 = vmatpush3.bf16.msra.mxu1 %v4397_v29 }
 0x638   : > { %4024 = vmatprep.subr.bf16.mxu1 %v4821_v21 }
 0x63b   : > { %4025 = vmatpush3.bf16.msra.mxu1 %v4398_v30 }
 0x63c   : > { %4026 = vmatprep.subr.bf16.mxu1 %v4821_v21 }
 0x63f   : > { %4027 = vmatpush3.bf16.msra.mxu1 %v4399_v18 }
 0x640   : > { %4028 = vmatprep.subr.bf16.mxu1 %v4821_v21 }
 0x643   : > { %4029 = vmatpush3.bf16.msra.mxu1 %v4400_v31 }
 0x644   : > { %4030 = vmatprep.subr.bf16.mxu1 %v4821_v21 }
 0x647   : > { %4031 = vmatpush3.bf16.msra.mxu1 %v4401_v32 }
 0x648   : > { %4032 = vmatprep.subr.bf16.mxu1 %v4821_v21 }
 0x64b   : > { %4033 = vmatpush3.bf16.msra.mxu1 %v4402_v33 }
 0x64c   : > { %4034 = vmatprep.subr.bf16.mxu1 %v4821_v21 }
 0x64f   : > { %4035 = vmatpush3.bf16.msra.mxu1 %v4403_v51 }
 0x650   : > { %4036 = vmatprep.subr.bf16.mxu1 %v4821_v21  ;;  %v3651_v21 = vld [vmem:[%s873_s19] ss:$0 sm:$0xff] }
 0x653   : > { %4037 = vmatpush3.bf16.msra.mxu1 %v4404_v52 }
 0x6a9   : > { %v2516_v62 = vpop.f32.mrb[32].mxu0 }
 0x6aa   : > { %v3940_v63 = vpop.f32.mrb[33].mxu0 }
 0x6ab   : > { %v2519_v22 = vpop.f32.mrb[34].mxu0 }
 0x6ac   : > { %v3941_v41 = vpop.f32.mrb[35].mxu0 }
 0x6c9   : > { %v2604_v59 = vpop.f32.mrb[32].mxu1 }
 0x6ca   : > { %v2786_v0 = vadd.f32 %v2604_v59, %v2516_v62  ;;  %v3960_v36 = vpop.f32.mrb[33].mxu1 }
 0x6cb   : > { %v2607_v1 = vpop.f32.mrb[34].mxu1 }
 0x6cc   : > { %v3961_v2 = vpop.f32.mrb[35].mxu1 }
 0x6e9   : > { %v2692_v3 = vpop.f32.mrb[36].mxu0 }
 0x6ea   : > { %v2787_v4 = vadd.f32 %v2786_v0, %v2692_v3  ;;  %v3980_v5 = vpop.f32.mrb[37].mxu0 }
 0x6eb   : > { %v2695_v6 = vpop.f32.mrb[38].mxu0 }
 0x6ec   : > { %v3981_v7 = vpop.f32.mrb[39].mxu0 }
 0x709   : > { %v2780_v8 = vpop.f32.mrb[36].mxu1 }
 0x70a   : > { %v2788_v10 = vadd.f32 %v2787_v4, %v2780_v8  ;;  %v4000_v11 = vpop.f32.mrb[37].mxu1 }
 0x70b   : > { %v2783_v12 = vpop.f32.mrb[38].mxu1  ;;  %v3661_v11 = vld [vmem:[%s885_s20] ss:$0 sm:$0xff]  ;;  %s6005_s20 = sld [smem:[#allocation51_spill]] (!%p3662_p5) }
 0x70c   : > { %v2796_v13 = vadd.f32 %v3639_v9, %v2788_v10  ;;  %v4001_v14 = vpop.f32.mrb[39].mxu1  ;;  %v3660_v9 = vld [vmem:[%s882_s27] ss:$0 sm:$0xff] }
 0x70d   : > { %v4426_v14 = vld [vmem:[#allocation13] sm:$0xff] (!%p3662_p5)  }
 0x70e   : > { %v2797_v16 = vadd.f32 %v4425_v15, %v2796_v13  ;;  %v4823_v15 = vmov (!%p3662_p5), 0.0  }
 0x70f   : > { %4042 = vmatprep.subr.bf16.mxu0 (!%p3662_p5), %v4823_v15 }
 0x710   : > { %2800 = vadd.xlane.f32.xlu0 %v2797_v16  ;;  %v2803_v17 = vmul.f32 %v2797_v16, %v2797_v16 }
 0x711   : > { %v3663_v28 = vld [vmem:[%s6005_s20] ss:$0 sm:$0xff] (!%p3662_p5) }
 0x712   : > { %2804 = vadd.xlane.f32.xlu1 %v2803_v17  ;;  %v4428_v17 = vld [vmem:[#allocation13 + $0x10] sm:$0xff] (!%p3662_p5)  }
 0x79d   : > { %v2801_v34 = vpop.xlane.xlu0 %2800 }
 0x79e   : > { %v2802_v35 = vmul.f32 0.03125, %v2801_v34 }
 0x79f   : > { %v2805_v37 = vpop.xlane.xlu1 %2804 }
 0x7a0   : > { %v2807_v38 = vmul.f32 %v2802_v35, %v2802_v35  ;;  %v2806_v39 = vmul.f32 0.03125, %v2805_v37  ;;  %v2809_v43 = vsub.f32 %v2797_v16, %v2802_v35  ;;  %v4427_v16 = vld [vmem:[#allocation13 + $0x8] sm:$0xff] (!%p3662_p5)  }
 0x7a2   : > { %v2808_v40 = vsub.f32 %v2806_v39, %v2807_v38 }
 0x7a4   : > { %v2810_v42 = vadd.f32 1e-05, %v2808_v40 }
 0x7a6   : > { %4421 = vrsqrt.f32 %v2810_v42 }
 0x7b0   : > { %v4422_v44 = vpop.eup %4421 }
 0x7b1   : > { %v2812_v46 = vmul.f32 %v4422_v44, %v2809_v43 }
 0x7b3   : > { %v2819_v48 = vmul.f32 %v3640_v45, %v2812_v46 }
 0x7b5   : > { %v2826_v49 = vadd.f32 %v3641_v47, %v2819_v48 }
 0x7b7   : > { %v2827_v50 = vpack.c.bf16 %v2826_v49, %v2826_v49 }
 0x7b9   : > { %4019 = vmatmul.mubr.bf16.vlgmr.msra.gmra.mrb[40].mxu0 %v2827_v50 }
 0x7ba   : > { %4043 = vmatpush3.bf16.msra.mxu0 (!%p3662_p5), %v4426_v14  ;;  %4058 = vmatprep.mubr.msk.bf16.mxu0 (!%p3662_p5), %vm4824_vm3, %v4823_v15 }
 0x7bb   : > { %4044 = vmatprep.subr.bf16.mxu0 (!%p3662_p5), %v4823_v15 }
 0x7be   : > { %4045 = vmatpush3.bf16.msra.mxu0 (!%p3662_p5), %v4427_v16 }
 0x7bf   : > { %4046 = vmatprep.subr.bf16.mxu0 (!%p3662_p5), %v4823_v15 }
 0x7c2   : > { %4047 = vmatpush3.bf16.msra.mxu0 (!%p3662_p5), %v4428_v17 }
 0x7c3   : > { %4048 = vmatprep.subr.bf16.mxu0 (!%p3662_p5), %v4823_v15 }
 0x7c6   : > { %4049 = vmatpush3.bf16.msra.mxu0 (!%p3662_p5), %v4429_v19 }
 0x7c7   : > { %4050 = vmatprep.subr.bf16.mxu0 (!%p3662_p5), %v4823_v15 }
 0x7ca   : > { %4051 = vmatpush3.bf16.msra.mxu0 (!%p3662_p5), %v4430_v23 }
 0x7cb   : > { %4052 = vmatprep.subr.bf16.mxu0 (!%p3662_p5), %v4823_v15 }
 0x7ce   : > { %4053 = vmatpush3.bf16.msra.mxu0 (!%p3662_p5), %v4431_v24 }
 0x7cf   : > { %4054 = vmatprep.subr.bf16.mxu0 (!%p3662_p5), %v4823_v15 }
 0x7d2   : > { %4055 = vmatpush3.bf16.msra.mxu0 (!%p3662_p5), %v4432_v25 }
 0x7d3   : > { %4056 = vmatprep.subr.bf16.mxu0 (!%p3662_p5), %v4823_v15 }
 0x7d6   : > { %4057 = vmatpush3.bf16.msra.mxu0 (!%p3662_p5), %v4433_v26 }
 0x88c   : > { %v2933_v55 = vpop.f32.mrb[40].mxu0 }
 0x88d   : > { %v2934_v56 = vadd.f32 %v3642_v53, %v2933_v55  ;;  %v4020_v57 = vpop.f32.mrb[41].mxu0 }
 0x88e   : > { %v2936_v20 = vpop.f32.mrb[42].mxu0 }
 0x88f   : > { %v2939_v54 = vmax.f32 %v2934_v56, 0.0  ;;  %v4021_v58 = vpop.f32.mrb[43].mxu0 }
 0x891   : > { %v2940_v60 = vpack.c.bf16 %v2939_v54, %v2939_v54 }
 0x893   : > { %4039 = vmatmul.mubr.bf16.vlgmr.msra.gmra.mrb[40].mxu1 %v2940_v60 }
 0x966   : > { %v3046_v61 = vpop.f32.mrb[40].mxu1 }
 0x967   : > { %v3047_v62 = vadd.f32 %v3651_v21, %v3046_v61  ;;  %v4040_v63 = vpop.f32.mrb[41].mxu1 }
 0x968   : > { %v3049_v22 = vpop.f32.mrb[42].mxu1 }
 0x969   : > { %v3052_v41 = vadd.f32 %v3047_v62, %v2826_v49  ;;  %v4041_v59 = vpop.f32.mrb[43].mxu1 }
 0x96b   : > { %3055 = vadd.xlane.f32.xlu0 %v3052_v41  ;;  %v3058_v0 = vmul.f32 %v3052_v41, %v3052_v41 }
 0x96d   : > { %3059 = vadd.xlane.f32.xlu1 %v3058_v0 }
 0x9f8   : > { %v3056_v36 = vpop.xlane.xlu0 %3055 }
 0x9f9   : > { %v3057_v1 = vmul.f32 0.03125, %v3056_v36 }
 0x9fa   : > { %v3060_v2 = vpop.xlane.xlu1 %3059 }
 0x9fb   : > { %v3062_v3 = vmul.f32 %v3057_v1, %v3057_v1  ;;  %v3061_v4 = vmul.f32 0.03125, %v3060_v2  ;;  %v3064_v7 = vsub.f32 %v3052_v41, %v3057_v1 }
 0x9fd   : > { %v3063_v5 = vsub.f32 %v3061_v4, %v3062_v3 }
 0x9ff   : > { %v3065_v6 = vadd.f32 1e-05, %v3063_v5 }
 0xa01   : > { %4423 = vrsqrt.f32 %v3065_v6 }
 0xa0b   : > { %v4424_v8 = vpop.eup %4423 }
 0xa0c   : > { %v3067_v10 = vmul.f32 %v4424_v8, %v3064_v7  ;;  %3086 = sbr.rel (%p3662_p5) target bundleno = 2795 (0xaeb), region = 128 }
 0xa0e   : > { %v3074_v12 = vmul.f32 %v3660_v9, %v3067_v10 }
 0xa10   : > { %v3081_v13 = vadd.f32 %v3661_v11, %v3074_v12 }
 0xa12   : > { %3082 = vst [vmem:[#allocation2] sm:$0xff] %v3081_v13  ;;  %v3087_v27 = vpack.c.bf16 (!%p3662_p5), %v3081_v13, %v3081_v13 }
 0xa14   : > { %4059 = vmatmul.mubr.bf16.vlgmr.msra.gmra.mrb[0].mxu0 %v3087_v27 }
 0xae7   : > { %v3193_v29 = vpop.f32.mrb[0].mxu0 }
 0xae8   : > { %v3194_v30 = vadd.f32 %v3663_v28, %v3193_v29  ;;  %v4060_v18 = vpop.f32.mrb[1].mxu0 }
 0xae9   : > { %v3196_v31 = vpop.f32.mrb[2].mxu0 }
 0xaea   : > { %3199 = vst [vmem:[%s864_s8] sm:$0xff] %v3194_v30  ;;  %v4061_v32 = vpop.f32.mrb[3].mxu0 }
 0xaeb PF: > { %s6006_s9 = sld [smem:[#allocation25_spill]]  ;;  %s6007_s25 = sld [smem:[#allocation34_spill]] }
 0xaec   : > { %s6008_s12 = sld [smem:[#allocation52_spill]]  ;;  %s3214_s11 = sshll.u32 %s864_s8, 4  ;;  %s3215_s11 = int_to_ptr.vmem [resolvable:$true] %s3214_s11 }
 0xaed   : > { %s6009_s17 = sand.u32 1, %s4780_s28   ;;  %s4670_s14 = scalar_lea.vmem %s3215_s11, 128 }
 0xaee   : > { %s3201_s23 = scalar_lea.sflag [#allocation5], %s6009_s17  ;;  %p4671_p0 = scmp.ne.s32.totalorder %s3215_s11, %s4670_s14 }
 0xaef   : > { %s4825_s3 = smov [#allocation14]  }
 0xaf0   : > { %s4674_s26 = sshll.u32 %s4825_s3, 4  ;;  %s4675_s26 = int_to_ptr.vmem [resolvable:$false] %s4674_s26 }
 0xaf1   : > { %s3673_s18 = sshll.u32 %s6006_s9, 7  ;;  %p6010_p11 = scmp.ne.s32.totalorder %s6007_s25, 0 }
 0xaf2   : > { %s5803_s29 = scalar_lea.hbm %s6008_s12, %s3673_s18  ;;  %s4676_s21 = scalar_lea.vmem %s4675_s26, 256 }
 0xaf3   : > { %p4672_p9 = pnand %p4671_p0, %p6010_p11  ;;  %p4677_p3 = scmp.lt.s32.totalorder %s3215_s11, %s4675_s26 }
 0xaf4   : > { %p4678_p7 = scmp.lt.s32.totalorder %s4676_s21, %s4670_s14 }
 0xaf5   : > { %p4673_p6 = pneg %p4672_p9 }
 0xaf6   : > { %p4679_p1 = por %p4678_p7, %p4677_p3 }
 0xaf8   : > { %p4680_p4 = pnand %p4679_p1, %p4673_p6 }
 0xafa   : > { %4683 = shalt.err (!%p4680_p4)
}
 0xafb   : > { %s4684_s16 = scalar_lea.hbm %s5803_s29, 128  ;;  %s4688_s15 = scalar_lea.hbm %s6008_s12, 256 }
 0xafc   : > { %p4685_p13 = scmp.ne.s32.totalorder %s5803_s29, %s4684_s16  ;;  %p4689_p10 = scmp.lt.u32.totalorder %s5803_s29, %s6008_s12 }
 0xafd   : > { %p4690_p2 = scmp.lt.u32.totalorder %s4688_s15, %s4684_s16  ;;  %p4692_p0 = scmp.lt.u32.totalorder %s4684_s16, %s5803_s29 }
 0xafe   : > { %p4686_p8 = pnand %p4685_p13, %p6010_p11 }
 0xaff   : > { %p4691_p5 = por %p4690_p2, %p4689_p10 }
 0xb00   : > { %p4687_p12 = pneg %p4686_p8 }
 0xb01   : > { %p4693_p9 = por %p4692_p0, %p4691_p5 }
 0xb03   : > { %p4694_p6 = pnand %p4693_p9, %p4687_p12 }
 0xb05   : > { %4697 = shalt.err (!%p4694_p6)
}
 0xb06   : > { %4088 = dma.vmem_to_hbm [thread:$0]  (%p6010_p11), %s3215_s11, 128, %s5803_s29, %s3201_s23  }
 0xb07 PF: > { %s6011_s6 = sld [smem:[#allocation28_spill]]  ;;  %s6012_s22 = sld [smem:[#allocation22_spill]] }
 0xb08   : > { %s6013_s19 = sld [smem:[#allocation33_spill]] }
 0xb0d   : > { %p4125_p3 = scmp.ge.s32.totalorder %s6011_s6, 2  ;;  %s3226_s5 = sand.u32 1, %s6012_s22  }
 0xb0e   : > { %p6014_p7 = scmp.ne.s32.totalorder %s6013_s19, 0  ;;  %s3227_s0 = scalar_lea.sflag [#allocation5], %s3226_s5 }
 0xb10   : > { %p4117_p1 = pnand %p4125_p3, %p6014_p7 }
 0xb12   : > { %4759 = dma.done.wait (!%p4117_p1), %s3227_s0, 128  }
 0xb13   : > { %4761 = vsyncadd (!%p4117_p1), %s3227_s0, 4294967168  ;;  %s34_s1 = sadd.s32 1, %s6011_s6   ;;  %s6015_s24 = sld [smem:[#allocation20_spill]] }
 0xb14   : > { %p31_p4 = scmp.ge.s32.totalorder %s34_s1, 6   ;;  %s6016_s25 = sld [smem:[#allocation21_spill]] }
 0xb15   : > { %s6017_s26 = sld [smem:[#allocation31_spill]]  ;;  %s6018_s2 = sld [smem:[#allocation23_spill]] }
 0xb16   : > { %s6019_s29 = sld [smem:[#allocation32_spill]]  ;;  %s6020_s0 = sld [smem:[#allocation26_spill]] }
 0xb17   : > { %s6021_s30 = sld [smem:[#allocation27_spill]]  ;;  %s6022_s18 = sld [smem:[#allocation29_spill]] }
 0xb18   : > { %s6023_s19 = sld [smem:[#allocation30_spill]]  ;;  %s6024_s27 = smov %s4780_s28 }
 0xb19   :  { %33 = sbr.rel (!%p31_p4) target bundleno = 29 (0x1d), region = 225 }
 0xb1b   : > { %s6025_s28 = smov %s6018_s2 }
 0xb20   :  { %3232 = vsyncpa [#allocation4], 1 }
 0xb21   :  { %3234 = vsyncpa [#allocation4 + $0x1], 1 }
 0xb22   :  { %3235 = vsyncpa [#allocation7], 1 }
 0xb23   :  { %3236 = vsyncpa [#allocation5], 1 }
 0xb24   :  { %3238 = vsyncpa [#allocation5 + $0x1], 1 }

</bundles_post_ra>
